<compile_context>
chip_gen: v7x
topology: tpu7x:2x2x1
jax: 0.10.0
libtpu: 0.0.40
codegen_flags: <defaults>
</compile_context>

<pallas_src>
import math
import functools

import jax
import jax.numpy as jnp
from jax.experimental import pallas as pl
from jax.experimental.pallas import tpu as pltpu


# ------------------------------ helpers --------------------------------------

def _pick_fr_block(embed_dim, n_fre):
    """Smallest fre-block whose lane width (FB * E) is 128-aligned (or full)."""
    if embed_dim % 128 == 0:
        return 1
    base = 128 // math.gcd(embed_dim, 128)
    if base <= n_fre and n_fre % base == 0:
        return base
    # TODO(synk): for a large n_fre that is not a multiple of `base` this falls
    # back to a full-extent block (always layout-legal) and unrolls n_fre times.
    return n_fre


def _vmem_limit_bytes():
    """Per-generation VMEM budget (v5e/v6e: 128 MiB physical, v7x: 64 MiB)."""
    cap = None
    try:
        cap = getattr(pltpu.get_tpu_info(), "vmem_capacity_bytes", None)
    except Exception:
        cap = None
    if not cap:
        cap = 64 << 20                      # conservative (v7x) default
    return int(max(32 << 20, min(cap - (16 << 20), 100 << 20)))


# ------------------------------ fused kernel ---------------------------------

def _fused_mha_kernel(x_ref, wqkv_ref, bqkv_ref, wo_ref, bo_ref, o_ref, *,
                      n_tim, fr_block, embed_dim, num_heads, head_dim,
                      scale, compute_dtype):
    T, FB, E, H, hd = n_tim, fr_block, embed_dim, num_heads, head_dim

    wqkv = wqkv_ref[...].astype(compute_dtype)      # (3E, E), slot-major rows
    bqkv = bqkv_ref[...].astype(jnp.float32)        # (3E, 1)
    wo = wo_ref[...].astype(compute_dtype)          # (E, E)
    bo = bo_ref[...].astype(jnp.float32)            # (E, 1)
    x_slab = x_ref[0]                               # (T, FB*E) lane-dense slab

    outs = []
    for f in range(FB):      # FB == 1 whenever E % 128 == 0 (no unroll at all)
        xf = x_slab[:, f * E:(f + 1) * E].astype(compute_dtype)       # (T, E)

        # qkv^T = Wqkv @ xf^T : projected channels land on sublanes, so the
        # per-head views below are cheap sublane slices/reshapes (no narrow
        # lane slices, no head concatenation).
        qkv_t = jax.lax.dot_general(
            wqkv, xf, (((1,), (1,)), ((), ())),
            preferred_element_type=jnp.float32) + bqkv                 # (3E, T)

        q_t = qkv_t[0:E].reshape(H, hd, T)                             # (H,hd,T)
        k_t = qkv_t[E:2 * E].reshape(H, hd, T)
        v_t = qkv_t[2 * E:3 * E].reshape(H, hd, T)
        q_b = jnp.swapaxes(q_t, 1, 2)                                  # (H,T,hd)
        v_b = jnp.swapaxes(v_t, 1, 2)                                  # (H,S,hd)

        # All heads batched in one dot_general (leading batch dim).
        logits = jax.lax.dot_general(
            q_b.astype(compute_dtype), k_t.astype(compute_dtype),
            (((2,), (1,)), ((0,), (0,))),
            preferred_element_type=jnp.float32) * scale                # (H,T,S)

        m = jnp.max(logits, axis=-1, keepdims=True)
        p = jnp.exp(logits - m)
        denom = jnp.sum(p, axis=-1, keepdims=True)
        r = pl.reciprocal(denom, approx=True)                          # EUP slot
        r = r * (2.0 - denom * r)              # one Newton step -> f32 accuracy
        attn = p * r                                                   # f32

        vals = jax.lax.dot_general(
            attn.astype(compute_dtype), v_b.astype(compute_dtype),
            (((2,), (1,)), ((0,), (0,))),
            preferred_element_type=jnp.float32)                        # (H,T,hd)

        vals_t = jnp.swapaxes(vals, 1, 2).reshape(E, T)   # (E,T), row = h*hd+d
        o_t = jax.lax.dot_general(
            wo, vals_t.astype(compute_dtype), (((1,), (0,)), ((), ())),
            preferred_element_type=jnp.float32) + bo                   # (E, T)
        outs.append(jnp.swapaxes(o_t, 0, 1))                           # (T, E)

    tile = outs[0] if FB == 1 else jnp.concatenate(outs, axis=-1)      # (T,FB*E)
    o_ref[0] = tile.astype(o_ref.dtype)          # single lane-dense tile store


# ------------------------------- forward -------------------------------------

def multihead_attention_forward(x, params, num_heads, residual=False,
                                mask=None, return_attention=False,
                                matmul_dtype=None):
    """Matches MultiheadAttention.forward(x, mask=None, return_attention=False)."""
    if mask is not None:
        # TODO(synk): expand_mask + masked_fill path is not wired into the kernel.
        raise NotImplementedError("mask is not supported by the Pallas kernel")
    if return_attention:
        # TODO(synk): returning the per-head attention map is not wired up.
        raise NotImplementedError("return_attention=True is not supported")

    B, C, Fr, T = x.shape
    E = C
    H = num_heads
    assert E % H == 0, "embed_dim must be divisible by num_heads"
    hd = E // H
    assert params["w_qkv"].shape == (3 * E, E)

    # Row-permute the qkv weight/bias once (trace time, free) so the projected
    # channels come out slot-major: [q | k | v], each E wide with index h*hd+d.
    w_qkv = params["w_qkv"].reshape(H, 3, hd, E).transpose(1, 0, 2, 3).reshape(3 * E, E)
    b_qkv = params["b_qkv"].reshape(H, 3, hd).transpose(1, 0, 2).reshape(3 * E, 1)
    w_o = params["w_o"]
    b_o = params["b_o"].reshape(E, 1)
    if matmul_dtype is not None:                  # e.g. jnp.bfloat16 on v6e/v7x
        w_qkv = w_qkv.astype(matmul_dtype)
        w_o = w_o.astype(matmul_dtype)
    compute_dtype = jnp.dtype(matmul_dtype) if matmul_dtype is not None else x.dtype

    # torch `.reshape(B, T, Fr, C)` on the contiguous tensor is a raw row-major
    # reinterpretation; flatten the trailing (Fr, C) pair so the kernel sees a
    # lane-dense (T, FB*E) slab per grid step.  Both reshapes are free.
    x2 = x.reshape(B, T, Fr * E)

    FB = _pick_fr_block(E, Fr)
    scale = 1.0 / math.sqrt(hd)

    kern = functools.partial(
        _fused_mha_kernel, n_tim=T, fr_block=FB, embed_dim=E,
        num_heads=H, head_dim=hd, scale=scale, compute_dtype=compute_dtype)

    groups = B * Fr * H
    itemsize = x.dtype.itemsize
    cost = pl.CostEstimate(
        flops=2 * B * T * Fr * E * 4 * E + groups * (4 * T * T * hd + 5 * T * T),
        transcendentals=groups * (T * T + T),
        bytes_accessed=itemsize * 2 * B * T * Fr * E + 4 * (4 * E * E + 4 * E),
    )

    o2 = pl.pallas_call(
        kern,
        out_shape=jax.ShapeDtypeStruct((B, T, Fr * E), x.dtype),
        grid=(B, Fr // FB),
        in_specs=[
            # x slab: lane-dense (T, FB*E) tile per (batch, fre-block) step.
            pl.BlockSpec((1, T, FB * E), lambda b, f: (b, 0, f)),
            # Weights / biases: constant index map -> resident in VMEM for the
            # whole fused qkv-proj -> attention -> o-proj pipeline.
            # (For huge E on v7x, single-buffering them via pl.Buffered(1) or
            #  K-tiling the projection would reclaim VMEM.)
            pl.BlockSpec((3 * E, E), lambda b, f: (0, 0)),
            pl.BlockSpec((3 * E, 1), lambda b, f: (0, 0)),
            pl.BlockSpec((E, E), lambda b, f: (0, 0)),
            pl.BlockSpec((E, 1), lambda b, f: (0, 0)),
        ],
        out_specs=pl.BlockSpec((1, T, FB * E), lambda b, f: (b, 0, f)),
        compiler_params=pltpu.CompilerParams(
            dimension_semantics=("parallel", "parallel"),
            vmem_limit_bytes=_vmem_limit_bytes(),
        ),
        cost_estimate=cost,
    )(x2, w_qkv, b_qkv, w_o, b_o)

    o = o2.reshape(B, C, Fr, T)      # raw reshape back, matches the torch module
    if residual:
        o = o + x
    return o


# ---------------------------- parameter init ---------------------------------

def init_params(key, embed_dim):
    """xavier_uniform_ weights (PyTorch Linear layout (out, in)), zero biases."""
    k1, k2 = jax.random.split(key)

    def xavier(k, out_f, in_f):
        a = math.sqrt(6.0 / (in_f + out_f))
        return jax.random.uniform(k, (out_f, in_f), jnp.float32, -a, a)

    return {
        "w_qkv": xavier(k1, 3 * embed_dim, embed_dim),
        "b_qkv": jnp.zeros((3 * embed_dim,), jnp.float32),
        "w_o": xavier(k2, embed_dim, embed_dim),
        "b_o": jnp.zeros((embed_dim,), jnp.float32),
    }


# ---------------------------- pure-JAX reference -----------------------------

def reference_forward(x, params, num_heads, residual=False):
    B, C, Fr, T = x.shape
    E = C
    hd = E // num_heads
    xr = x.reshape(B, T, Fr, C)
    qkv = xr @ params["w_qkv"].T + params["b_qkv"]
    qkv = qkv.reshape(B, T, Fr, num_heads, 3 * hd)
    qkv = jnp.transpose(qkv, (0, 3, 2, 1, 4))
    q, k, v = jnp.split(qkv, 3, axis=-1)
    logits = jnp.einsum("bhftd,bhfsd->bhfts", q, k) / math.sqrt(hd)
    attn = jax.nn.softmax(logits, axis=-1)
    vals = jnp.einsum("bhfts,bhfsd->bhftd", attn, v)
    vals = jnp.transpose(vals, (0, 3, 2, 1, 4)).reshape(B, T, Fr, E)
    o = vals @ params["w_o"].T + params["b_o"]
    o = o.reshape(B, C, Fr, T)
    if residual:
        o = o + x
    return o


# --------------------------------- main ---------------------------------------

if __name__ == "__main__":
    B, embed_dim, num_heads = 2, 32, 4
    n_fre, n_tim = 4, 8          # x: (batch, ch_dim=embed_dim, n_fre, n_tim)

    key = jax.random.PRNGKey(0)
    kx, kp = jax.random.split(key)
    x = jax.random.normal(kx, (B, embed_dim, n_fre, n_tim), jnp.float32)
    params = init_params(kp, embed_dim)

    fwd = jax.jit(functools.partial(
        multihead_attention_forward, num_heads=num_heads, residual=False))
    out = jax.block_until_ready(fwd(x, params))

    ref = reference_forward(x, params, num_heads, residual=False)
    assert out.shape == (B, embed_dim, n_fre, n_tim)
    assert jnp.allclose(out, ref, atol=1e-4, rtol=1e-4), "mismatch vs reference"

    print("KERNEL_OK")
</pallas_src>

<mosaic_0001>
module attributes {stable_mosaic.version = 11 : i64} {
  func.func @_fused_mha_kernel(%arg0: i32, %arg1: i32, %arg2: memref<1x8x128xf32, #tpu.memory_space<vmem>>, %arg3: memref<96x32xf32, #tpu.memory_space<vmem>>, %arg4: memref<96x1xf32, #tpu.memory_space<vmem>>, %arg5: memref<32x32xf32, #tpu.memory_space<vmem>>, %arg6: memref<32x1xf32, #tpu.memory_space<vmem>>, %arg7: memref<1x8x128xf32, #tpu.memory_space<vmem>>) attributes {dimension_semantics = [#tpu.dimension_semantics<parallel>, #tpu.dimension_semantics<parallel>], iteration_bounds = array<i64: 2, 1>, scalar_prefetch = 0 : i64, scratch_operands = 0 : i64, tpu.core_type = #tpu.core_type<tc>, window_params = [{transform_indices = @transform_0, window_bounds = array<i64: 1, 8, 128>}, {pipeline_mode = #tpu.pipeline_mode<synchronous>, transform_indices = @transform_1, window_bounds = array<i64: 96, 32>}, {pipeline_mode = #tpu.pipeline_mode<synchronous>, transform_indices = @transform_2, window_bounds = array<i64: 96, 1>}, {pipeline_mode = #tpu.pipeline_mode<synchronous>, transform_indices = @transform_3, window_bounds = array<i64: 32, 32>}, {pipeline_mode = #tpu.pipeline_mode<synchronous>, transform_indices = @transform_4, window_bounds = array<i64: 32, 1>}, {transform_indices = @transform_5, window_bounds = array<i64: 1, 8, 128>}]} {
    %c0 = arith.constant 0 : index
    %c0_0 = arith.constant 0 : index
    %0 = vector.load %arg3[%c0, %c0_0] : memref<96x32xf32, #tpu.memory_space<vmem>>, vector<96x32xf32>
    %c0_1 = arith.constant 0 : index
    %c0_2 = arith.constant 0 : index
    %1 = vector.load %arg4[%c0_1, %c0_2] : memref<96x1xf32, #tpu.memory_space<vmem>>, vector<96x1xf32>
    %c0_3 = arith.constant 0 : index
    %c0_4 = arith.constant 0 : index
    %2 = vector.load %arg5[%c0_3, %c0_4] : memref<32x32xf32, #tpu.memory_space<vmem>>, vector<32x32xf32>
    %c0_5 = arith.constant 0 : index
    %c0_6 = arith.constant 0 : index
    %3 = vector.load %arg6[%c0_5, %c0_6] : memref<32x1xf32, #tpu.memory_space<vmem>>, vector<32x1xf32>
    %c0_7 = arith.constant 0 : index
    %c0_8 = arith.constant 0 : index
    %c0_9 = arith.constant 0 : index
    %4 = vector.load %arg2[%c0_7, %c0_8, %c0_9] : memref<1x8x128xf32, #tpu.memory_space<vmem>>, vector<1x8x128xf32>
    %5 = vector.shape_cast %4 : vector<1x8x128xf32> to vector<8x128xf32>
    %6 = vector.extract_strided_slice %5 {offsets = [0, 0], sizes = [8, 32], strides = [1, 1]} : vector<8x128xf32> to vector<8x32xf32>
    %cst = arith.constant dense<0.000000e+00> : vector<96x8xf32>
    %7 = tpu.matmul %0, %6, %cst {dimension_numbers = #tpu.dot_dimension_numbers<[1], [1], [0], [0], [0, 0, 1, 0], [], []>} : vector<96x32xf32>, vector<8x32xf32>, vector<96x8xf32> -> vector<96x8xf32>
    %8 = vector.broadcast %1 : vector<96x1xf32> to vector<96x8xf32>
    %9 = arith.addf %7, %8 : vector<96x8xf32>
    %10 = vector.extract_strided_slice %9 {offsets = [0, 0], sizes = [32, 8], strides = [1, 1]} : vector<96x8xf32> to vector<32x8xf32>
    %11 = vector.shape_cast %10 : vector<32x8xf32> to vector<4x8x8xf32>
    %12 = vector.extract_strided_slice %9 {offsets = [32, 0], sizes = [32, 8], strides = [1, 1]} : vector<96x8xf32> to vector<32x8xf32>
    %13 = vector.shape_cast %12 : vector<32x8xf32> to vector<4x8x8xf32>
    %14 = vector.extract_strided_slice %9 {offsets = [64, 0], sizes = [32, 8], strides = [1, 1]} : vector<96x8xf32> to vector<32x8xf32>
    %15 = vector.shape_cast %14 : vector<32x8xf32> to vector<4x8x8xf32>
    %16 = tpu.transpose %11, [0, 2, 1] : vector<4x8x8xf32> -> vector<4x8x8xf32>
    %17 = tpu.transpose %15, [0, 2, 1] : vector<4x8x8xf32> -> vector<4x8x8xf32>
    %cst_10 = arith.constant dense<0.000000e+00> : vector<4x8x8xf32>
    %18 = tpu.matmul %16, %13, %cst_10 {dimension_numbers = #tpu.dot_dimension_numbers<[2], [1], [1], [2], [0, 0, 0, 1, 1, 2], [0], [0]>} : vector<4x8x8xf32>, vector<4x8x8xf32>, vector<4x8x8xf32> -> vector<4x8x8xf32>
    %cst_11 = arith.constant 0.353553385 : f32
    %19 = vector.broadcast %cst_11 : f32 to vector<4x8x8xf32>
    %20 = arith.mulf %18, %19 : vector<4x8x8xf32>
    %cst_12 = arith.constant dense<0xFF800000> : vector<4x8xf32>
    %21 = vector.multi_reduction <maximumf>, %20, %cst_12 [2] : vector<4x8x8xf32> to vector<4x8xf32>
    %22 = vector.shape_cast %21 : vector<4x8xf32> to vector<4x8x1xf32>
    %23 = vector.broadcast %22 : vector<4x8x1xf32> to vector<4x8x8xf32>
    %24 = arith.subf %20, %23 : vector<4x8x8xf32>
    %25 = math.exp %24 : vector<4x8x8xf32>
    %cst_13 = arith.constant dense<0.000000e+00> : vector<4x8xf32>
    %26 = vector.multi_reduction <add>, %25, %cst_13 [2] : vector<4x8x8xf32> to vector<4x8xf32>
    %27 = vector.shape_cast %26 : vector<4x8xf32> to vector<4x8x1xf32>
    %28 = tpu.reciprocal %27 {approx = true} : vector<4x8x1xf32> -> vector<4x8x1xf32>
    %29 = arith.mulf %27, %28 : vector<4x8x1xf32>
    %cst_14 = arith.constant 2.000000e+00 : f32
    %30 = vector.broadcast %cst_14 : f32 to vector<4x8x1xf32>
    %31 = arith.subf %30, %29 : vector<4x8x1xf32>
    %32 = arith.mulf %28, %31 : vector<4x8x1xf32>
    %33 = vector.broadcast %32 : vector<4x8x1xf32> to vector<4x8x8xf32>
    %34 = arith.mulf %25, %33 : vector<4x8x8xf32>
    %cst_15 = arith.constant dense<0.000000e+00> : vector<4x8x8xf32>
    %35 = tpu.matmul %34, %17, %cst_15 {dimension_numbers = #tpu.dot_dimension_numbers<[2], [1], [1], [2], [0, 0, 0, 1, 1, 2], [0], [0]>} : vector<4x8x8xf32>, vector<4x8x8xf32>, vector<4x8x8xf32> -> vector<4x8x8xf32>
    %36 = tpu.transpose %35, [0, 2, 1] : vector<4x8x8xf32> -> vector<4x8x8xf32>
    %37 = vector.shape_cast %36 : vector<4x8x8xf32> to vector<32x8xf32>
    %cst_16 = arith.constant dense<0.000000e+00> : vector<32x8xf32>
    %38 = tpu.matmul %2, %37, %cst_16 {dimension_numbers = #tpu.dot_dimension_numbers<[1], [0], [0], [1], [0, 0, 1, 1], [], []>} : vector<32x32xf32>, vector<32x8xf32>, vector<32x8xf32> -> vector<32x8xf32>
    %39 = vector.broadcast %3 : vector<32x1xf32> to vector<32x8xf32>
    %40 = arith.addf %38, %39 : vector<32x8xf32>
    %41 = tpu.transpose %40, [1, 0] : vector<32x8xf32> -> vector<8x32xf32>
    %42 = vector.extract_strided_slice %5 {offsets = [0, 32], sizes = [8, 32], strides = [1, 1]} : vector<8x128xf32> to vector<8x32xf32>
    %cst_17 = arith.constant dense<0.000000e+00> : vector<96x8xf32>
    %43 = tpu.matmul %0, %42, %cst_17 {dimension_numbers = #tpu.dot_dimension_numbers<[1], [1], [0], [0], [0, 0, 1, 0], [], []>} : vector<96x32xf32>, vector<8x32xf32>, vector<96x8xf32> -> vector<96x8xf32>
    %44 = vector.broadcast %1 : vector<96x1xf32> to vector<96x8xf32>
    %45 = arith.addf %43, %44 : vector<96x8xf32>
    %46 = vector.extract_strided_slice %45 {offsets = [0, 0], sizes = [32, 8], strides = [1, 1]} : vector<96x8xf32> to vector<32x8xf32>
    %47 = vector.shape_cast %46 : vector<32x8xf32> to vector<4x8x8xf32>
    %48 = vector.extract_strided_slice %45 {offsets = [32, 0], sizes = [32, 8], strides = [1, 1]} : vector<96x8xf32> to vector<32x8xf32>
    %49 = vector.shape_cast %48 : vector<32x8xf32> to vector<4x8x8xf32>
    %50 = vector.extract_strided_slice %45 {offsets = [64, 0], sizes = [32, 8], strides = [1, 1]} : vector<96x8xf32> to vector<32x8xf32>
    %51 = vector.shape_cast %50 : vector<32x8xf32> to vector<4x8x8xf32>
    %52 = tpu.transpose %47, [0, 2, 1] : vector<4x8x8xf32> -> vector<4x8x8xf32>
    %53 = tpu.transpose %51, [0, 2, 1] : vector<4x8x8xf32> -> vector<4x8x8xf32>
    %cst_18 = arith.constant dense<0.000000e+00> : vector<4x8x8xf32>
    %54 = tpu.matmul %52, %49, %cst_18 {dimension_numbers = #tpu.dot_dimension_numbers<[2], [1], [1], [2], [0, 0, 0, 1, 1, 2], [0], [0]>} : vector<4x8x8xf32>, vector<4x8x8xf32>, vector<4x8x8xf32> -> vector<4x8x8xf32>
    %cst_19 = arith.constant 0.353553385 : f32
    %55 = vector.broadcast %cst_19 : f32 to vector<4x8x8xf32>
    %56 = arith.mulf %54, %55 : vector<4x8x8xf32>
    %cst_20 = arith.constant dense<0xFF800000> : vector<4x8xf32>
    %57 = vector.multi_reduction <maximumf>, %56, %cst_20 [2] : vector<4x8x8xf32> to vector<4x8xf32>
    %58 = vector.shape_cast %57 : vector<4x8xf32> to vector<4x8x1xf32>
    %59 = vector.broadcast %58 : vector<4x8x1xf32> to vector<4x8x8xf32>
    %60 = arith.subf %56, %59 : vector<4x8x8xf32>
    %61 = math.exp %60 : vector<4x8x8xf32>
    %cst_21 = arith.constant dense<0.000000e+00> : vector<4x8xf32>
    %62 = vector.multi_reduction <add>, %61, %cst_21 [2] : vector<4x8x8xf32> to vector<4x8xf32>
    %63 = vector.shape_cast %62 : vector<4x8xf32> to vector<4x8x1xf32>
    %64 = tpu.reciprocal %63 {approx = true} : vector<4x8x1xf32> -> vector<4x8x1xf32>
    %65 = arith.mulf %63, %64 : vector<4x8x1xf32>
    %cst_22 = arith.constant 2.000000e+00 : f32
    %66 = vector.broadcast %cst_22 : f32 to vector<4x8x1xf32>
    %67 = arith.subf %66, %65 : vector<4x8x1xf32>
    %68 = arith.mulf %64, %67 : vector<4x8x1xf32>
    %69 = vector.broadcast %68 : vector<4x8x1xf32> to vector<4x8x8xf32>
    %70 = arith.mulf %61, %69 : vector<4x8x8xf32>
    %cst_23 = arith.constant dense<0.000000e+00> : vector<4x8x8xf32>
    %71 = tpu.matmul %70, %53, %cst_23 {dimension_numbers = #tpu.dot_dimension_numbers<[2], [1], [1], [2], [0, 0, 0, 1, 1, 2], [0], [0]>} : vector<4x8x8xf32>, vector<4x8x8xf32>, vector<4x8x8xf32> -> vector<4x8x8xf32>
    %72 = tpu.transpose %71, [0, 2, 1] : vector<4x8x8xf32> -> vector<4x8x8xf32>
    %73 = vector.shape_cast %72 : vector<4x8x8xf32> to vector<32x8xf32>
    %cst_24 = arith.constant dense<0.000000e+00> : vector<32x8xf32>
    %74 = tpu.matmul %2, %73, %cst_24 {dimension_numbers = #tpu.dot_dimension_numbers<[1], [0], [0], [1], [0, 0, 1, 1], [], []>} : vector<32x32xf32>, vector<32x8xf32>, vector<32x8xf32> -> vector<32x8xf32>
    %75 = vector.broadcast %3 : vector<32x1xf32> to vector<32x8xf32>
    %76 = arith.addf %74, %75 : vector<32x8xf32>
    %77 = tpu.transpose %76, [1, 0] : vector<32x8xf32> -> vector<8x32xf32>
    %78 = vector.extract_strided_slice %5 {offsets = [0, 64], sizes = [8, 32], strides = [1, 1]} : vector<8x128xf32> to vector<8x32xf32>
    %cst_25 = arith.constant dense<0.000000e+00> : vector<96x8xf32>
    %79 = tpu.matmul %0, %78, %cst_25 {dimension_numbers = #tpu.dot_dimension_numbers<[1], [1], [0], [0], [0, 0, 1, 0], [], []>} : vector<96x32xf32>, vector<8x32xf32>, vector<96x8xf32> -> vector<96x8xf32>
    %80 = vector.broadcast %1 : vector<96x1xf32> to vector<96x8xf32>
    %81 = arith.addf %79, %80 : vector<96x8xf32>
    %82 = vector.extract_strided_slice %81 {offsets = [0, 0], sizes = [32, 8], strides = [1, 1]} : vector<96x8xf32> to vector<32x8xf32>
    %83 = vector.shape_cast %82 : vector<32x8xf32> to vector<4x8x8xf32>
    %84 = vector.extract_strided_slice %81 {offsets = [32, 0], sizes = [32, 8], strides = [1, 1]} : vector<96x8xf32> to vector<32x8xf32>
    %85 = vector.shape_cast %84 : vector<32x8xf32> to vector<4x8x8xf32>
    %86 = vector.extract_strided_slice %81 {offsets = [64, 0], sizes = [32, 8], strides = [1, 1]} : vector<96x8xf32> to vector<32x8xf32>
    %87 = vector.shape_cast %86 : vector<32x8xf32> to vector<4x8x8xf32>
    %88 = tpu.transpose %83, [0, 2, 1] : vector<4x8x8xf32> -> vector<4x8x8xf32>
    %89 = tpu.transpose %87, [0, 2, 1] : vector<4x8x8xf32> -> vector<4x8x8xf32>
    %cst_26 = arith.constant dense<0.000000e+00> : vector<4x8x8xf32>
    %90 = tpu.matmul %88, %85, %cst_26 {dimension_numbers = #tpu.dot_dimension_numbers<[2], [1], [1], [2], [0, 0, 0, 1, 1, 2], [0], [0]>} : vector<4x8x8xf32>, vector<4x8x8xf32>, vector<4x8x8xf32> -> vector<4x8x8xf32>
    %cst_27 = arith.constant 0.353553385 : f32
    %91 = vector.broadcast %cst_27 : f32 to vector<4x8x8xf32>
    %92 = arith.mulf %90, %91 : vector<4x8x8xf32>
    %cst_28 = arith.constant dense<0xFF800000> : vector<4x8xf32>
    %93 = vector.multi_reduction <maximumf>, %92, %cst_28 [2] : vector<4x8x8xf32> to vector<4x8xf32>
    %94 = vector.shape_cast %93 : vector<4x8xf32> to vector<4x8x1xf32>
    %95 = vector.broadcast %94 : vector<4x8x1xf32> to vector<4x8x8xf32>
    %96 = arith.subf %92, %95 : vector<4x8x8xf32>
    %97 = math.exp %96 : vector<4x8x8xf32>
    %cst_29 = arith.constant dense<0.000000e+00> : vector<4x8xf32>
    %98 = vector.multi_reduction <add>, %97, %cst_29 [2] : vector<4x8x8xf32> to vector<4x8xf32>
    %99 = vector.shape_cast %98 : vector<4x8xf32> to vector<4x8x1xf32>
    %100 = tpu.reciprocal %99 {approx = true} : vector<4x8x1xf32> -> vector<4x8x1xf32>
    %101 = arith.mulf %99, %100 : vector<4x8x1xf32>
    %cst_30 = arith.constant 2.000000e+00 : f32
    %102 = vector.broadcast %cst_30 : f32 to vector<4x8x1xf32>
    %103 = arith.subf %102, %101 : vector<4x8x1xf32>
    %104 = arith.mulf %100, %103 : vector<4x8x1xf32>
    %105 = vector.broadcast %104 : vector<4x8x1xf32> to vector<4x8x8xf32>
    %106 = arith.mulf %97, %105 : vector<4x8x8xf32>
    %cst_31 = arith.constant dense<0.000000e+00> : vector<4x8x8xf32>
    %107 = tpu.matmul %106, %89, %cst_31 {dimension_numbers = #tpu.dot_dimension_numbers<[2], [1], [1], [2], [0, 0, 0, 1, 1, 2], [0], [0]>} : vector<4x8x8xf32>, vector<4x8x8xf32>, vector<4x8x8xf32> -> vector<4x8x8xf32>
    %108 = tpu.transpose %107, [0, 2, 1] : vector<4x8x8xf32> -> vector<4x8x8xf32>
    %109 = vector.shape_cast %108 : vector<4x8x8xf32> to vector<32x8xf32>
    %cst_32 = arith.constant dense<0.000000e+00> : vector<32x8xf32>
    %110 = tpu.matmul %2, %109, %cst_32 {dimension_numbers = #tpu.dot_dimension_numbers<[1], [0], [0], [1], [0, 0, 1, 1], [], []>} : vector<32x32xf32>, vector<32x8xf32>, vector<32x8xf32> -> vector<32x8xf32>
    %111 = vector.broadcast %3 : vector<32x1xf32> to vector<32x8xf32>
    %112 = arith.addf %110, %111 : vector<32x8xf32>
    %113 = tpu.transpose %112, [1, 0] : vector<32x8xf32> -> vector<8x32xf32>
    %114 = vector.extract_strided_slice %5 {offsets = [0, 96], sizes = [8, 32], strides = [1, 1]} : vector<8x128xf32> to vector<8x32xf32>
    %cst_33 = arith.constant dense<0.000000e+00> : vector<96x8xf32>
    %115 = tpu.matmul %0, %114, %cst_33 {dimension_numbers = #tpu.dot_dimension_numbers<[1], [1], [0], [0], [0, 0, 1, 0], [], []>} : vector<96x32xf32>, vector<8x32xf32>, vector<96x8xf32> -> vector<96x8xf32>
    %116 = vector.broadcast %1 : vector<96x1xf32> to vector<96x8xf32>
    %117 = arith.addf %115, %116 : vector<96x8xf32>
    %118 = vector.extract_strided_slice %117 {offsets = [0, 0], sizes = [32, 8], strides = [1, 1]} : vector<96x8xf32> to vector<32x8xf32>
    %119 = vector.shape_cast %118 : vector<32x8xf32> to vector<4x8x8xf32>
    %120 = vector.extract_strided_slice %117 {offsets = [32, 0], sizes = [32, 8], strides = [1, 1]} : vector<96x8xf32> to vector<32x8xf32>
    %121 = vector.shape_cast %120 : vector<32x8xf32> to vector<4x8x8xf32>
    %122 = vector.extract_strided_slice %117 {offsets = [64, 0], sizes = [32, 8], strides = [1, 1]} : vector<96x8xf32> to vector<32x8xf32>
    %123 = vector.shape_cast %122 : vector<32x8xf32> to vector<4x8x8xf32>
    %124 = tpu.transpose %119, [0, 2, 1] : vector<4x8x8xf32> -> vector<4x8x8xf32>
    %125 = tpu.transpose %123, [0, 2, 1] : vector<4x8x8xf32> -> vector<4x8x8xf32>
    %cst_34 = arith.constant dense<0.000000e+00> : vector<4x8x8xf32>
    %126 = tpu.matmul %124, %121, %cst_34 {dimension_numbers = #tpu.dot_dimension_numbers<[2], [1], [1], [2], [0, 0, 0, 1, 1, 2], [0], [0]>} : vector<4x8x8xf32>, vector<4x8x8xf32>, vector<4x8x8xf32> -> vector<4x8x8xf32>
    %cst_35 = arith.constant 0.353553385 : f32
    %127 = vector.broadcast %cst_35 : f32 to vector<4x8x8xf32>
    %128 = arith.mulf %126, %127 : vector<4x8x8xf32>
    %cst_36 = arith.constant dense<0xFF800000> : vector<4x8xf32>
    %129 = vector.multi_reduction <maximumf>, %128, %cst_36 [2] : vector<4x8x8xf32> to vector<4x8xf32>
    %130 = vector.shape_cast %129 : vector<4x8xf32> to vector<4x8x1xf32>
    %131 = vector.broadcast %130 : vector<4x8x1xf32> to vector<4x8x8xf32>
    %132 = arith.subf %128, %131 : vector<4x8x8xf32>
    %133 = math.exp %132 : vector<4x8x8xf32>
    %cst_37 = arith.constant dense<0.000000e+00> : vector<4x8xf32>
    %134 = vector.multi_reduction <add>, %133, %cst_37 [2] : vector<4x8x8xf32> to vector<4x8xf32>
    %135 = vector.shape_cast %134 : vector<4x8xf32> to vector<4x8x1xf32>
    %136 = tpu.reciprocal %135 {approx = true} : vector<4x8x1xf32> -> vector<4x8x1xf32>
    %137 = arith.mulf %135, %136 : vector<4x8x1xf32>
    %cst_38 = arith.constant 2.000000e+00 : f32
    %138 = vector.broadcast %cst_38 : f32 to vector<4x8x1xf32>
    %139 = arith.subf %138, %137 : vector<4x8x1xf32>
    %140 = arith.mulf %136, %139 : vector<4x8x1xf32>
    %141 = vector.broadcast %140 : vector<4x8x1xf32> to vector<4x8x8xf32>
    %142 = arith.mulf %133, %141 : vector<4x8x8xf32>
    %cst_39 = arith.constant dense<0.000000e+00> : vector<4x8x8xf32>
    %143 = tpu.matmul %142, %125, %cst_39 {dimension_numbers = #tpu.dot_dimension_numbers<[2], [1], [1], [2], [0, 0, 0, 1, 1, 2], [0], [0]>} : vector<4x8x8xf32>, vector<4x8x8xf32>, vector<4x8x8xf32> -> vector<4x8x8xf32>
    %144 = tpu.transpose %143, [0, 2, 1] : vector<4x8x8xf32> -> vector<4x8x8xf32>
    %145 = vector.shape_cast %144 : vector<4x8x8xf32> to vector<32x8xf32>
    %cst_40 = arith.constant dense<0.000000e+00> : vector<32x8xf32>
    %146 = tpu.matmul %2, %145, %cst_40 {dimension_numbers = #tpu.dot_dimension_numbers<[1], [0], [0], [1], [0, 0, 1, 1], [], []>} : vector<32x32xf32>, vector<32x8xf32>, vector<32x8xf32> -> vector<32x8xf32>
    %147 = vector.broadcast %3 : vector<32x1xf32> to vector<32x8xf32>
    %148 = arith.addf %146, %147 : vector<32x8xf32>
    %149 = tpu.transpose %148, [1, 0] : vector<32x8xf32> -> vector<8x32xf32>
    %150 = tpu.concatenate %41, %77, %113, %149 in 1 : vector<8x32xf32>, vector<8x32xf32>, vector<8x32xf32>, vector<8x32xf32> -> vector<8x128xf32>
    %c0_41 = arith.constant 0 : index
    %c0_42 = arith.constant 0 : index
    %c0_43 = arith.constant 0 : index
    %151 = vector.load %arg7[%c0_41, %c0_42, %c0_43] : memref<1x8x128xf32, #tpu.memory_space<vmem>>, vector<1x8x128xf32>
    %152 = vector.shape_cast %151 : vector<1x8x128xf32> to vector<8x128xf32>
    %153 = vector.shape_cast %150 : vector<8x128xf32> to vector<1x8x128xf32>
    tpu.vector_store %arg7[%c0_41, %c0_42, %c0_43], %153 {strides = array<i32>} : memref<1x8x128xf32, #tpu.memory_space<vmem>>, vector<1x8x128xf32>,
    return
  }
  func.func @transform_0(%arg0: i32, %arg1: i32) -> (i32, i32, i32) {
    %c0_i32 = arith.constant 0 : i32
    %c0_i32_0 = arith.constant 0 : i32
    return %arg0, %c0_i32, %arg1 : i32, i32, i32
  }
  func.func @transform_1(%arg0: i32, %arg1: i32) -> (i32, i32) {
    %c0_i32 = arith.constant 0 : i32
    %c0_i32_0 = arith.constant 0 : i32
    %c0_i32_1 = arith.constant 0 : i32
    return %c0_i32, %c0_i32_0 : i32, i32
  }
  func.func @transform_2(%arg0: i32, %arg1: i32) -> (i32, i32) {
    %c0_i32 = arith.constant 0 : i32
    %c0_i32_0 = arith.constant 0 : i32
    %c0_i32_1 = arith.constant 0 : i32
    return %c0_i32, %c0_i32_0 : i32, i32
  }
  func.func @transform_3(%arg0: i32, %arg1: i32) -> (i32, i32) {
    %c0_i32 = arith.constant 0 : i32
    %c0_i32_0 = arith.constant 0 : i32
    %c0_i32_1 = arith.constant 0 : i32
    return %c0_i32, %c0_i32_0 : i32, i32
  }
  func.func @transform_4(%arg0: i32, %arg1: i32) -> (i32, i32) {
    %c0_i32 = arith.constant 0 : i32
    %c0_i32_0 = arith.constant 0 : i32
    %c0_i32_1 = arith.constant 0 : i32
    return %c0_i32, %c0_i32_0 : i32, i32
  }
  func.func @transform_5(%arg0: i32, %arg1: i32) -> (i32, i32, i32) {
    %c0_i32 = arith.constant 0 : i32
    %c0_i32_0 = arith.constant 0 : i32
    return %arg0, %c0_i32, %arg1 : i32, i32, i32
  }
}

</mosaic_0001>

<bundles_post_ra>
// kernel: multihead_attention_forward.1
= control target key start
LH: loop header
LB: loop body
LE: loop exit
PB: predicated region body
PF: predicated region fallthrough
CT: control target
= control target key end

     0   :  { %s5969_s18 = smov 0   ;;  %s5971_s19 = smov 0   ;;  %s6637_s0 = inlined_call_operand.vmem [shape: f32[2,8,128], index: 0, kind: input, shape index: {}]   ;;  %s6638_s1 = inlined_call_operand.vmem [shape: f32[96,32], index: 1, kind: input, shape index: {}]   ;;  %s6639_s2 = inlined_call_operand.vmem [shape: f32[96,1], index: 2, kind: input, shape index: {}]   ;;  %s6640_s3 = inlined_call_operand.vmem [shape: f32[32,32], index: 3, kind: input, shape index: {}]   ;;  %s6641_s4 = inlined_call_operand.vmem [shape: f32[32,1], index: 4, kind: input, shape index: {}]   ;;  %s6642_s5 = inlined_call_operand.vmem [shape: f32[2,8,128], index: 5, kind: output, shape index: {}]  }
   0x1   :  { %s5973_s20 = smov 0  }
   0x2 LB: > { %s27_s21 = sadd.s32 1, %s5927_s19  ;;  %p5141_p0 = scmp.ge.s32.totalorder %s5931_s20, 1  ;;  %s5931_s20 = sphi %s5973_s20, %s15_s20   ;;  %s5927_s19 = sphi %s5971_s19, %s6644_s19   ;;  %s5923_s18 = sphi %s5969_s18, %s6643_s18  }
   0x3   : > { %p29_p1 = scmp.ge.s32.totalorder %s27_s21, 2  ;;  %p205_p2 = scmp.lt.s32.totalorder %s5931_s20, 3 }
   0x5   : > { %s6646_s21 = smov (%p29_p1, %s27_s21), 0  ;;  %p206_p3 = pnand %p5141_p0, %p205_p2 }
   0x6   : > { %p237_p4 = scmp.lt.s32.totalorder (!%p206_p3), %s5923_s18, 1  ;;  %vm344_vm0 = vcmask (!%p206_p3), 261120   ;;  %v5990_v0 = vld [vmem:[%s6638_s1] sm:$0xff] (!%p206_p3)  ;;  %v5933_v1 = vmov (!%p206_p3), 0   ;;  %v265_v3 = vld [vmem:[%s6639_s2 + $0x10] sm:$0xff] (!%p206_p3)  ;;  %v264_v4 = vld [vmem:[%s6639_s2 + $0x8] sm:$0xff] (!%p206_p3) }
   0x7   : > { %209 = sbr.rel (%p206_p3) target bundleno = 4439 (0x1157), region = 40  ;;  %5412 = vmatprep.mubr.msk.f32.mxu0 (!%p206_p3), %vm344_vm0, %v5990_v0  ;;  %5770 = vset.pattern.permute.xlu0 (!%p206_p3), %v5933_v1  ;;  %v263_v2 = vld [vmem:[%s6639_s2] sm:$0xff] (!%p206_p3)  ;;  %v266_v5 = vld [vmem:[%s6639_s2 + $0x18] sm:$0xff] (!%p206_p3)  ;;  %v6026_v7 = vld [vmem:[%s6638_s1 + $0x8] sm:$0xff] (!%p206_p3)  ;;  %v5934_v19 = vmov (!%p206_p3), 0.0   ;;  %vm5935_vm1 = vmmov (!%p206_p3), 0  }
   0x8   : > { %5771 = vset.pattern.permute.xlu1 (!%p206_p3), %v5933_v1  ;;  %286 = vperm.xlu0 (!%p206_p3), %5770, %v263_v2   ;;  %v267_v8 = vld [vmem:[%s6639_s2 + $0x20] sm:$0xff] (!%p206_p3)  ;;  %v6034_v9 = vld [vmem:[%s6638_s1 + $0x10] sm:$0xff] (!%p206_p3)  ;;  %v268_v10 = vld [vmem:[%s6639_s2 + $0x28] sm:$0xff] (!%p206_p3)  ;;  %vm637_vm2 = vcmask (!%p206_p3), 64512   ;;  %s5936_s11 = smov (!%p206_p3), 96   ;;  %s5937_s24 = smov (!%p206_p3), 64  }
   0x9   : > { %296 = vperm.xlu1 (!%p206_p3), %5771, %v265_v3   ;;  %v6050_v11 = vld [vmem:[%s6638_s1 + $0x18] sm:$0xff] (!%p206_p3)  ;;  %v269_v12 = vld [vmem:[%s6639_s2 + $0x30] sm:$0xff] (!%p206_p3)  ;;  %v6058_v13 = vld [vmem:[%s6638_s1 + $0x20] sm:$0xff] (!%p206_p3)  ;;  %s5938_s25 = smov (!%p206_p3), 32   ;;  %vm5058_vm3 = vcmask (!%p206_p3), 523264   ;;  %vm5060_vm4 = vcmask (!%p206_p3), 785408  }
   0xa   : > { %v270_v14 = vld [vmem:[%s6639_s2 + $0x38] sm:$0xff] (!%p206_p3)  ;;  %v6070_v15 = vld [vmem:[%s6638_s1 + $0x28] sm:$0xff] (!%p206_p3)  ;;  %v6075_v16 = vld [vmem:[%s6638_s1 + $0x30] sm:$0xff] (!%p206_p3) }
   0xb   : > { %v6084_v17 = vld [vmem:[%s6638_s1 + $0x38] sm:$0xff] (!%p206_p3)  ;;  %v6091_v18 = vld [vmem:[%s6638_s1 + $0x50] sm:$0xff] (!%p206_p3)  ;;  %v6125_v39 = vld [vmem:[%s6638_s1 + $0x40] sm:$0xff] (!%p206_p3) }
   0xc   : > { %291 = vperm.xlu0 (!%p206_p3), %5770, %v264_v4   ;;  %5427 = vmatprep.mubr.msk.f32.mxu1 (!%p206_p3), %vm344_vm0, %v6091_v18  ;;  %v6099_v20 = vld [vmem:[%s6638_s1 + $0x58] sm:$0xff] (!%p206_p3)  ;;  %v6130_v40 = vld [vmem:[%s6638_s1 + $0x48] sm:$0xff] (!%p206_p3) }
   0xd   : > { %301 = vperm.xlu1 (!%p206_p3), %5771, %v266_v5  }
   0xe   : > { %s6648_s18 = smov (!%p237_p4, %s5923_s18), 1 }
   0xf   : > { %s5142_s28 = sshll.u32 %s6648_s18, 3 }
  0x10   : > { %s6011_s8 = scalar_lea.vmem %s6637_s0, %s5142_s28  ;;  %306 = vperm.xlu0 %5770, %v267_v8   ;;  %v271_v8 = vld [vmem:[%s6639_s2 + $0x40] sm:$0xff]  ;;  %s250_s9 = scalar_lea.vmem %s6642_s5, %s5142_s28 }
  0x11   : > { %v6017_v6 = vld [vmem:[%s6011_s8] sm:$0xff]  ;;  %311 = vperm.xlu1 %5771, %v268_v10  }
  0x12   : > { %5410 = vmatprep.subr.msk.mxu0 %vm344_vm0, %v6017_v6  ;;  %5738 = vmatprep.subr.msk.mxu1 %vm344_vm0, %v6017_v6 }
  0x13   : > { %5411 = vmatpush3.xpose.msk.msra.mxu0 %vm344_vm0, %v6017_v6  ;;  %5739 = vmatpush3.xpose.msk.msra.mxu1 %vm344_vm0, %v6017_v6 }
  0x14   : > { %316 = vperm.xlu0 %5770, %v269_v12   ;;  %5430 = vmatprep.subr.mxu1 %v5934_v19 }
  0x15   : > { %321 = vperm.xlu1 %5771, %v270_v14   ;;  %5465 = vmatprep.subr.mxu0 %v5934_v19 }
  0x16   : > { %5413 = vmatmul.mubr.msk.f32.vlgmr.msra.gmra.mrb[0].mxu0 %vm344_vm0, %v6026_v7  ;;  %5428 = vmatmul.mubr.msk.f32.vlgmr.msra.gmra.mrb[0].mxu1 %vm344_vm0, %v6099_v20 }
  0x17   : > { %5415 = vmatprep.mubr.msk.f32.mxu0 %vm344_vm0, %v6034_v9  ;;  %5432 = vmatprep.mubr.msk.f32.mxu1 %vm5935_vm1, %v5934_v19 }
  0x1a   : > { %5416 = vmatmul.mubr.msk.f32.gmra.mrb[2].mxu0 %vm344_vm0, %v6050_v11 }
  0x1b   : > { %5418 = vmatprep.mubr.msk.f32.mxu0 %vm344_vm0, %v6058_v13 }
  0x1e   : > { %5419 = vmatmul.mubr.msk.f32.gmra.mrb[4].mxu0 %vm344_vm0, %v6070_v15 }
  0x1f   : > { %5421 = vmatprep.mubr.msk.f32.mxu0 %vm344_vm0, %v6075_v16 }
  0x22   : > { %5422 = vmatmul.mubr.msk.f32.gmra.mrb[6].mxu0 %vm344_vm0, %v6084_v17 }
  0x23   : > { %5424 = vmatprep.mubr.msk.f32.mxu0 %vm344_vm0, %v6125_v39 }
  0x26   : > { %5425 = vmatmul.mubr.msk.f32.gmra.mrb[8].mxu0 %vm344_vm0, %v6130_v40 }
  0x27   : > { %5467 = vmatprep.mubr.msk.f32.mxu0 %vm5935_vm1, %v5934_v19 }
  0x87   : > { %v6106_v21 = vpop.permute.xlu0 %286 }
  0x88   : > { %v6110_v24 = vpop.permute.xlu1 %296 }
  0x8b   : > { %v6108_v22 = vpop.permute.xlu0 %291 }
  0x8c   : > { %v6115_v31 = vpop.permute.xlu1 %301 }
  0x8f   : > { %v6118_v34 = vpop.permute.xlu0 %306 }
  0x90   : > { %v6142_v43 = vpop.permute.xlu1 %311 }
  0x93   : > { %v6144_v44 = vpop.permute.xlu0 %316 }
  0x94   : > { %v6146_v45 = vpop.permute.xlu1 %321 }
  0xe9   : > { %v5414_v23 = vpop.f32.mrb[0].mxu0  ;;  %v6138_v41 = vpop.f32.mrb[0].mxu1 }
  0xea   : > { %v456_v25 = vadd.f32 %v5414_v23, %v6108_v22  ;;  %v450_v26 = vpop.f32.mrb[1].mxu0  ;;  %v6140_v42 = vpop.f32.mrb[1].mxu1 }
  0xeb   : > { %v451_v27 = vadd.f32 %v450_v26, %v6106_v21 }
  0xec   : > { %541 = vxpose.xlu1.b32.start.end [1/1] (short) (narrow) %v456_v25, 8 }
  0xed   : > { %v5417_v28 = vpop.f32.mrb[2].mxu0  ;;  %509 = vxpose.xlu0.b32.start.end [1/1] (short) (narrow) %v451_v27, 8 }
  0xee   : > { %v460_v29 = vpop.f32.mrb[3].mxu0  ;;  %v466_v32 = vadd.f32 %v5417_v28, %v6115_v31 }
  0xef   : > { %v461_v30 = vadd.f32 %v460_v29, %v6110_v24 }
  0xf1   : > { %v5420_v33 = vpop.f32.mrb[4].mxu0  ;;  %573 = vxpose.xlu0.b32.start.end [1/1] (short) (narrow) %v461_v30, 8 }
  0xf2   : > { %v470_v35 = vpop.f32.mrb[5].mxu0  ;;  %v476_v46 = vadd.f32 %v5420_v33, %v6142_v43 }
  0xf3   : > { %v471_v36 = vadd.f32 %v470_v35, %v6118_v34 }
  0xf5   : > { %v5423_v37 = vpop.f32.mrb[6].mxu0  ;;  %5431 = vmatpush3.msra.mxu1 %v471_v36  ;;  %605 = vxpose.xlu0.b32.start.end [1/1] (short) (narrow) %v466_v32, 8 }
  0xf6   : > { %v480_v38 = vpop.f32.mrb[7].mxu0  ;;  %5435 = vmatprep.subr.mxu1 %v5934_v19  ;;  %v486_v51 = vadd.f32 %v5423_v37, %v6146_v45 }
  0xf7   : > { %v481_v49 = vadd.f32 %v480_v38, %v6144_v44 }
  0xf9   : > { %v6173_v10 = vpop.f32.mrb[8].mxu0 }
  0xfa   : > { %v490_v12 = vpop.f32.mrb[9].mxu0 }
 0x16c   : > { %v557_v48 = vpop.trf.xlu1 }
 0x16d   : > { %v525_v47 = vpop.trf.xlu0 }
 0x16e   : > { %5433 = vmatmul.mubr.msk.f32.vlgmr.msra.gmra.mrb[2].mxu1 %vm637_vm2, %v525_v47 }
 0x16f   : > { %5436 = vmatpush3.msra.mxu1 %v476_v46  ;;  %5437 = vmatprep.mubr.msk.f32.mxu1 %vm5935_vm1, %v5934_v19 }
 0x170   : > { %5440 = vmatprep.subr.mxu1 %v5934_v19 }
 0x171   : > { %v589_v50 = vpop.trf.xlu0 }
 0x172   : > { %5438 = vmatmul.mubr.msk.f32.vlgmr.msra.gmra.mrb[4].mxu1 %vm637_vm2, %v557_v48 }
 0x173   : > { %5441 = vmatpush3.msra.mxu1 %v481_v49  ;;  %5442 = vmatprep.mubr.msk.f32.mxu1 %vm5935_vm1, %v5934_v19 }
 0x174   : > { %5445 = vmatprep.subr.mxu1 %v5934_v19 }
 0x175   : > { %v621_v52 = vpop.trf.xlu0 }
 0x176   : > { %5443 = vmatmul.mubr.msk.f32.vlgmr.msra.gmra.mrb[6].mxu1 %vm637_vm2, %v589_v50 }
 0x177   : > { %5446 = vmatpush3.msra.mxu1 %v486_v51  ;;  %5447 = vmatprep.mubr.msk.f32.mxu1 %vm5935_vm1, %v5934_v19 }
 0x178   : > { %5450 = vmatprep.subr.mxu1 %v5934_v19 }
 0x17a   : > { %5448 = vmatmul.mubr.msk.f32.vlgmr.msra.gmra.mrb[8].mxu1 %vm637_vm2, %v621_v52 }
 0x17b   : > { %5452 = vmatprep.mubr.msk.f32.mxu1 %vm5935_vm1, %v5934_v19 }
 0x241   : > { %v707_v53 = vpop.f32.mrb[2].mxu1 }
 0x242   : > { %v930_v54 = vmul.f32 0.35355338, %v707_v53  ;;  %v5434_v55 = vpop.f32.mrb[3].mxu1 }
 0x243   : > { %v274_v55 = vld [vmem:[%s6639_s2 + $0x58] sm:$0xff] }
 0x244   : > { %v934_v56 = vsel %vm637_vm2, %v930_v54, -inf }
 0x245   : > { %935 = vmax.xlane.f32.xlu0 %v934_v56  ;;  %v780_v57 = vpop.f32.mrb[4].mxu1  ;;  %v272_v56 = vld [vmem:[%s6639_s2 + $0x48] sm:$0xff] }
 0x246   : > { %v931_v58 = vmul.f32 0.35355338, %v780_v57  ;;  %v5439_v59 = vpop.f32.mrb[5].mxu1 }
 0x248   : > { %v937_v60 = vsel %vm637_vm2, %v931_v58, -inf }
 0x249   : > { %938 = vmax.xlane.f32.xlu1 %v937_v60  ;;  %v853_v61 = vpop.f32.mrb[6].mxu1 }
 0x24a   : > { %v932_v62 = vmul.f32 0.35355338, %v853_v61  ;;  %v5444_v63 = vpop.f32.mrb[7].mxu1 }
 0x24c   : > { %v940_v1 = vsel %vm637_vm2, %v932_v62, -inf }
 0x24d   : > { %941 = vmax.xlane.f32.xlu1 %v940_v1  ;;  %v926_v2 = vpop.f32.mrb[8].mxu1 }
 0x24e   : > { %v933_v3 = vmul.f32 0.35355338, %v926_v2  ;;  %v5449_v4 = vpop.f32.mrb[9].mxu1 }
 0x250   : > { %v943_v5 = vsel %vm637_vm2, %v933_v3, -inf }
 0x251   : > { %944 = vmax.xlane.f32.xlu0 %v943_v5 }
 0x25e   : > { %326 = vperm.xlu1 %5771, %v271_v8  }
 0x2d2   : > { %v936_v14 = vpop.xlane.xlu0 %935 }
 0x2d3   : > { %v946_v23 = vsub.f32 %v930_v54, %v936_v14  ;;  %v273_v54 = vld [vmem:[%s6639_s2 + $0x50] sm:$0xff] }
 0x2d5   : > { %v950_v25 = vmul.f32 1.442695, %v946_v23 }
 0x2d6   : > { %v939_v26 = vpop.xlane.xlu1 %938 }
 0x2d7   : > { %5828 = vpow2.f32 %v950_v25  ;;  %v947_v27 = vsub.f32 %v931_v58, %v939_v26 }
 0x2d9   : > { %v952_v28 = vmul.f32 1.442695, %v947_v27 }
 0x2da   : > { %v942_v29 = vpop.xlane.xlu1 %941 }
 0x2db   : > { %5830 = vpow2.f32 %v952_v28  ;;  %v948_v30 = vsub.f32 %v932_v62, %v942_v29 }
 0x2dd   : > { %v954_v32 = vmul.f32 1.442695, %v948_v30 }
 0x2de   : > { %v6175_v33 = vpop.permute.xlu1 %326  ;;  %v945_v35 = vpop.xlane.xlu0 %944 }
 0x2df   : > { %5832 = vpow2.f32 %v954_v32  ;;  %v491_v36 = vadd.f32 %v490_v12, %v6175_v33  ;;  %v949_v37 = vsub.f32 %v933_v3, %v945_v35 }
 0x2e1   : > { %v5829_v38 = vpop.eup %5828  ;;  %v956_v46 = vmul.f32 1.442695, %v949_v37  ;;  %5451 = vmatpush3.xpose.msk.msra.mxu1 %vm637_vm2, %v491_v36 }
 0x2e2   : > { %v958_v47 = vsel %vm637_vm2, %v5829_v38, 0.0  ;;  %5455 = vmatprep.subr.mxu1 %v5934_v19 }
 0x2e3   : > { %5834 = vpow2.f32 %v956_v46  ;;  %959 = vadd.xlane.f32.xlu1 %v958_v47 }
 0x2e5   : > { %v5831_v48 = vpop.eup %5830 }
 0x2e6   : > { %v961_v49 = vsel %vm637_vm2, %v5831_v48, 0.0 }
 0x2e7   : > { %962 = vadd.xlane.f32.xlu0 %v961_v49 }
 0x2e9   : > { %v5833_v50 = vpop.eup %5832 }
 0x2ea   : > { %v964_v51 = vsel %vm637_vm2, %v5833_v50, 0.0 }
 0x2eb   : > { %965 = vadd.xlane.f32.xlu1 %v964_v51 }
 0x2ed   : > { %v5835_v52 = vpop.eup %5834 }
 0x2ee   : > { %v967_v53 = vsel %vm637_vm2, %v5835_v52, 0.0 }
 0x2ef   : > { %968 = vadd.xlane.f32.xlu0 %v967_v53 }
 0x2fc   : > { %336 = vperm.xlu1 %5771, %v273_v54  }
 0x300   : > { %341 = vperm.xlu1 %5771, %v274_v55  }
 0x305   : > { %331 = vperm.xlu0 %5770, %v272_v56  }
 0x309   : > { %1571 = vrot.lane.b32.xlu0 %v6017_v6, %s5936_s11 }
 0x370   : > { %v960_v57 = vpop.xlane.xlu1 %959 }
 0x371   : > { %5836 = vrcp.f32 %v960_v57 }
 0x374   : > { %v963_v58 = vpop.xlane.xlu0 %962 }
 0x375   : > { %5838 = vrcp.f32 %v963_v58 }
 0x378   : > { %v966_v59 = vpop.xlane.xlu1 %965 }
 0x379   : > { %5840 = vrcp.f32 %v966_v59 }
 0x37b   : > { %v5837_v60 = vpop.eup %5836 }
 0x37c   : > { %v974_v61 = vmul.f32 %v5837_v60, %v960_v57  ;;  %v6195_v62 = vpop.permute.xlu1 %336  ;;  %v969_v63 = vpop.xlane.xlu0 %968 }
 0x37d   : > { %5842 = vrcp.f32 %v969_v63  ;;  %v501_v37 = vadd.f32 %v6140_v42, %v6195_v62 }
 0x37e   : > { %v978_v1 = vsub.f32 2.0, %v974_v61 }
 0x37f   : > { %v5839_v2 = vpop.eup %5838 }
 0x380   : > { %v982_v3 = vmul.f32 %v5837_v60, %v978_v1  ;;  %v975_v4 = vmul.f32 %v5839_v2, %v963_v58  ;;  %v6197_v5 = vpop.permute.xlu1 %341 }
 0x381   : > { %v506_v8 = vadd.f32 %v6138_v41, %v6197_v5 }
 0x382   : > { %v986_v12 = vmul.f32 %v5829_v38, %v982_v3  ;;  %v979_v14 = vsub.f32 2.0, %v975_v4 }
 0x383   : > { %v5841_v23 = vpop.eup %5840  ;;  %5466 = vmatpush3.xpose.msk.msra.mxu0 %vm637_vm2, %v506_v8 }
 0x384   : > { %v983_v25 = vmul.f32 %v5839_v2, %v979_v14  ;;  %v976_v26 = vmul.f32 %v5841_v23, %v966_v59  ;;  %5453 = vmatmul.mubr.msk.f32.vlgmr.msra.gmra.mrb[10].mxu1 %vm637_vm2, %v986_v12  ;;  %v6203_v27 = vpop.permute.xlu0 %331 }
 0x385   : > { %v496_v28 = vadd.f32 %v6173_v10, %v6203_v27  ;;  %5457 = vmatprep.mubr.msk.f32.mxu1 %vm5935_vm1, %v5934_v19 }
 0x386   : > { %v980_v29 = vsub.f32 2.0, %v976_v26  ;;  %v987_v41 = vmul.f32 %v5831_v48, %v983_v25 }
 0x387   : > { %v5843_v30 = vpop.eup %5842  ;;  %5456 = vmatpush3.xpose.msk.msra.mxu1 %vm637_vm2, %v496_v28 }
 0x388   : > { %v984_v32 = vmul.f32 %v5841_v23, %v980_v29  ;;  %v977_v35 = vmul.f32 %v5843_v30, %v969_v63  ;;  %5460 = vmatprep.subr.mxu1 %v5934_v19  ;;  %v1572_v36 = vpop.permute.xlu0 %1571  ;;  %v6252_v63 = vld [vmem:[%s6640_s3] sm:$0xff] }
 0x389   : > { %5484 = vmatprep.subr.msk.mxu0 %vm344_vm0, %v1572_v36 }
 0x38a   : > { %v981_v38 = vsub.f32 2.0, %v977_v35  ;;  %5458 = vmatmul.mubr.msk.f32.vlgmr.msra.gmra.mrb[12].mxu1 %vm637_vm2, %v987_v41  ;;  %v988_v10 = vmul.f32 %v5833_v50, %v984_v32 }
 0x38b   : > { %5461 = vmatpush3.xpose.msk.msra.mxu1 %vm637_vm2, %v501_v37  ;;  %5462 = vmatprep.mubr.msk.f32.mxu1 %vm5935_vm1, %v5934_v19 }
 0x38c   : > { %v985_v46 = vmul.f32 %v5843_v30, %v981_v38 }
 0x38e   : > { %v989_v47 = vmul.f32 %v5835_v52, %v985_v46  ;;  %5463 = vmatmul.mubr.msk.f32.vlgmr.msra.gmra.mrb[14].mxu1 %vm637_vm2, %v988_v10  ;;  %v6269_v46 = vld [vmem:[%s6640_s3 + $0x8] sm:$0xff] }
 0x38f   : > { %5478 = vmatprep.mubr.msk.f32.mxu1 %vm344_vm0, %v6252_v63 }
 0x390   : > { %5468 = vmatmul.mubr.msk.f32.vlgmr.msra.gmra.mrb[10].mxu0 %vm637_vm2, %v989_v47  ;;  %v6275_v47 = vld [vmem:[%s6640_s3 + $0x10] sm:$0xff] }
 0x391   : > { %5485 = vmatpush3.xpose.msk.msra.mxu0 %vm344_vm0, %v1572_v36  ;;  %5486 = vmatprep.mubr.msk.f32.mxu0 %vm344_vm0, %v5990_v0 }
 0x392   : > { %5524 = vmatprep.subr.mxu0 %v5934_v19 }
 0x394   : > { %5487 = vmatmul.mubr.msk.f32.vlgmr.msra.gmra.mrb[12].mxu0 %vm344_vm0, %v6026_v7 }
 0x395   : > { %5489 = vmatprep.mubr.msk.f32.mxu0 %vm344_vm0, %v6034_v9 }
 0x398   : > { %5490 = vmatmul.mubr.msk.f32.gmra.mrb[14].mxu0 %vm344_vm0, %v6050_v11 }
 0x399   : > { %5492 = vmatprep.mubr.msk.f32.mxu0 %vm344_vm0, %v6058_v13 }
 0x39c   : > { %5493 = vmatmul.mubr.msk.f32.gmra.mrb[16].mxu0 %vm344_vm0, %v6070_v15 }
 0x39d   : > { %5495 = vmatprep.mubr.msk.f32.mxu0 %vm344_vm0, %v6075_v16 }
 0x3a0   : > { %5496 = vmatmul.mubr.msk.f32.gmra.mrb[18].mxu0 %vm344_vm0, %v6084_v17 }
 0x3a1   : > { %5498 = vmatprep.mubr.msk.f32.mxu0 %vm344_vm0, %v6125_v39 }
 0x3a4   : > { %5499 = vmatmul.mubr.msk.f32.gmra.mrb[20].mxu0 %vm344_vm0, %v6130_v40 }
 0x3a5   : > { %5501 = vmatprep.mubr.msk.f32.mxu0 %vm344_vm0, %v6091_v18 }
 0x3a8   : > { %5502 = vmatmul.mubr.msk.f32.gmra.mrb[22].mxu0 %vm344_vm0, %v6099_v20 }
 0x3a9   : > { %5526 = vmatprep.mubr.msk.f32.mxu0 %vm5935_vm1, %v5934_v19 }
 0x457   : > { %v1062_v42 = vpop.f32.mrb[10].mxu1 }
 0x458   : > { %v5454_v48 = vpop.f32.mrb[11].mxu1 }
 0x459   : > { %v6285_v48 = vld [vmem:[%s6640_s3 + $0x18] sm:$0xff] }
 0x45d   : > { %v1138_v49 = vpop.f32.mrb[12].mxu1 }
 0x45e   : > { %v5772_v50 = vpack.i.bf16 %v1138_v49, %v1062_v42  ;;  %v5459_v51 = vpop.f32.mrb[13].mxu1 }
 0x460   : > { %5773 = vxpose.xlu1.b32.start.end [1/1] (short) (narrow) %v5772_v50, 8 }
 0x461   : > { %v1214_v52 = vpop.f32.mrb[14].mxu1 }
 0x462   : > { %v5464_v53 = vpop.f32.mrb[15].mxu1 }
 0x463   : > { %v1290_v54 = vpop.f32.mrb[10].mxu0 }
 0x464   : > { %v5779_v55 = vpack.i.bf16 %v1290_v54, %v1214_v52  ;;  %v5469_v56 = vpop.f32.mrb[11].mxu0 }
 0x466   : > { %5780 = vxpose.xlu0.b32.start.end [1/1] (short) (narrow) %v5779_v55, 8 }
 0x467   : > { %v5488_v57 = vpop.f32.mrb[12].mxu0 }
 0x468   : > { %v1641_v58 = vpop.f32.mrb[13].mxu0  ;;  %v1647_v1 = vadd.f32 %v5488_v57, %v6108_v22 }
 0x469   : > { %v1642_v59 = vadd.f32 %v1641_v58, %v6106_v21 }
 0x46b   : > { %v5491_v60 = vpop.f32.mrb[14].mxu0  ;;  %1700 = vxpose.xlu0.b32.start.end [1/1] (short) (narrow) %v1642_v59, 8 }
 0x46c   : > { %v1651_v61 = vpop.f32.mrb[15].mxu0  ;;  %v1657_v8 = vadd.f32 %v5491_v60, %v6115_v31 }
 0x46d   : > { %v1652_v2 = vadd.f32 %v1651_v61, %v6110_v24 }
 0x46f   : > { %v5494_v3 = vpop.f32.mrb[16].mxu0  ;;  %1764 = vxpose.xlu1.b32.start.end [1/1] (short) (narrow) %v1652_v2, 8  ;;  %1732 = vxpose.xlu0.b32.start.end [1/1] (short) (narrow) %v1647_v1, 8 }
 0x470   : > { %v1661_v4 = vpop.f32.mrb[17].mxu0  ;;  %v1667_v50 = vadd.f32 %v5494_v3, %v6142_v43 }
 0x471   : > { %v1662_v42 = vadd.f32 %v1661_v4, %v6118_v34 }
 0x473   : > { %v5497_v12 = vpop.f32.mrb[18].mxu0  ;;  %1796 = vxpose.xlu0.b32.start.end [1/1] (short) (narrow) %v1657_v8, 8 }
 0x474   : > { %v1671_v14 = vpop.f32.mrb[19].mxu0  ;;  %v1677_v54 = vadd.f32 %v5497_v12, %v6146_v45 }
 0x475   : > { %v1672_v52 = vadd.f32 %v1671_v14, %v6144_v44 }
 0x477   : > { %v5500_v23 = vpop.f32.mrb[20].mxu0 }
 0x478   : > { %v1681_v25 = vpop.f32.mrb[21].mxu0  ;;  %v1687_v56 = vadd.f32 %v5500_v23, %v6203_v27 }
 0x479   : > { %v1682_v26 = vadd.f32 %v1681_v25, %v6175_v33 }
 0x47b   : > { %v6260_v28 = vpop.f32.mrb[22].mxu0  ;;  %5525 = vmatpush3.xpose.msk.msra.mxu0 %vm637_vm2, %v1682_v26 }
 0x47c   : > { %v6263_v29 = vpop.f32.mrb[23].mxu0  ;;  %5534 = vmatprep.subr.mxu0 %v5934_v19 }
 0x4e0   : > { %v5774_v30 = vpop.trf.xlu1 }
 0x4e1   : > { %v5778_v41 = vunpack.i.h.bf16 %v5774_v30  ;;  %v5775_v32 = vunpack.i.l.bf16 %v5774_v30 }
 0x4e3   : > { %v5706_v35 = vpack.c.bf16 %v5778_v41, %v5775_v32 }
 0x4e5   : > { %5707 = vmatprep.subr.bf16.mxu1 %v5706_v35 }
 0x4e6   : > { %v5781_v36 = vpop.trf.xlu0  ;;  %5709 = vmatpush3.bf16.msra.mxu1 %v5706_v35 }
 0x4e7   : > { %v5785_v37 = vunpack.i.h.bf16 %v5781_v36  ;;  %v5782_v38 = vunpack.i.l.bf16 %v5781_v36 }
 0x4e9   : > { %v5710_v10 = vpack.c.bf16 %v5785_v37, %v5782_v38 }
 0x4eb   : > { %5711 = vmatprep.subr.bf16.mxu1 %v5710_v10  ;;  %v1716_v49 = vpop.trf.xlu0 }
 0x4ec   : > { %5713 = vmatpush3.bf16.msra.mxu1 %v5710_v10 }
 0x4ed   : > { %5504 = vmatprep.subr.mxu1 %v5934_v19 }
 0x4ef   : > { %5479 = vmatmul.mubr.msk.f32.vlgmr.msra.gmra.mrb[16].mxu1 %vm344_vm0, %v6269_v46  ;;  %v1748_v51 = vpop.trf.xlu0  ;;  %v1780_v53 = vpop.trf.xlu1 }
 0x4f0   : > { %5505 = vmatpush3.msra.mxu1 %v1662_v42  ;;  %5481 = vmatprep.mubr.msk.f32.mxu1 %vm344_vm0, %v6275_v47 }
 0x4f1   : > { %5509 = vmatprep.subr.mxu1 %v5934_v19 }
 0x4f3   : > { %5482 = vmatmul.mubr.msk.f32.gmra.mrb[18].mxu1 %vm344_vm0, %v6285_v48  ;;  %v1812_v55 = vpop.trf.xlu0 }
 0x4f4   : > { %5506 = vmatprep.mubr.msk.f32.mxu1 %vm5935_vm1, %v5934_v19 }
 0x4f7   : > { %5507 = vmatmul.mubr.msk.f32.vlgmr.msra.gmra.mrb[20].mxu1 %vm637_vm2, %v1716_v49 }
 0x4f8   : > { %5510 = vmatpush3.msra.mxu1 %v1667_v50  ;;  %5511 = vmatprep.mubr.msk.f32.mxu1 %vm5935_vm1, %v5934_v19 }
 0x4f9   : > { %5514 = vmatprep.subr.mxu1 %v5934_v19 }
 0x4fb   : > { %5512 = vmatmul.mubr.msk.f32.vlgmr.msra.gmra.mrb[22].mxu1 %vm637_vm2, %v1748_v51 }
 0x4fc   : > { %5515 = vmatpush3.msra.mxu1 %v1672_v52  ;;  %5516 = vmatprep.mubr.msk.f32.mxu1 %vm5935_vm1, %v5934_v19 }
 0x4fd   : > { %5519 = vmatprep.subr.mxu1 %v5934_v19 }
 0x4ff   : > { %5517 = vmatmul.mubr.msk.f32.vlgmr.msra.gmra.mrb[24].mxu1 %vm637_vm2, %v1780_v53 }
 0x500   : > { %5520 = vmatpush3.msra.mxu1 %v1677_v54  ;;  %5521 = vmatprep.mubr.msk.f32.mxu1 %vm5935_vm1, %v5934_v19 }
 0x501   : > { %5529 = vmatprep.subr.mxu1 %v5934_v19 }
 0x503   : > { %5522 = vmatmul.mubr.msk.f32.vlgmr.msra.gmra.mrb[26].mxu1 %vm637_vm2, %v1812_v55 }
 0x504   : > { %5531 = vmatprep.mubr.msk.f32.mxu1 %vm5935_vm1, %v5934_v19 }
 0x507   : > { %5530 = vmatpush3.xpose.msk.msra.mxu1 %vm637_vm2, %v1687_v56 }
 0x508   : > { %5539 = vmatprep.subr.mxu1 %v5934_v19 }
 0x5c2   : > { %v6313_v57 = vpop.f32.mrb[16].mxu1 }
 0x5c3   : > { %v6315_v58 = vpop.f32.mrb[17].mxu1 }
 0x5c6   : > { %v6317_v59 = vpop.f32.mrb[18].mxu1 }
 0x5c7   : > { %v6319_v60 = vpop.f32.mrb[19].mxu1 }
 0x5ca   : > { %v1897_v61 = vpop.f32.mrb[20].mxu1 }
 0x5cb   : > { %v2120_v1 = vmul.f32 0.35355338, %v1897_v61  ;;  %v5508_v2 = vpop.f32.mrb[21].mxu1 }
 0x5cd   : > { %v2124_v3 = vsel %vm637_vm2, %v2120_v1, -inf }
 0x5ce   : > { %2125 = vmax.xlane.f32.xlu1 %v2124_v3  ;;  %v1970_v4 = vpop.f32.mrb[22].mxu1 }
 0x5cf   : > { %v2121_v8 = vmul.f32 0.35355338, %v1970_v4  ;;  %v5513_v12 = vpop.f32.mrb[23].mxu1 }
 0x5d1   : > { %v2127_v14 = vsel %vm637_vm2, %v2121_v8, -inf }
 0x5d2   : > { %2128 = vmax.xlane.f32.xlu0 %v2127_v14  ;;  %v2043_v23 = vpop.f32.mrb[24].mxu1 }
 0x5d3   : > { %v2122_v25 = vmul.f32 0.35355338, %v2043_v23  ;;  %v5518_v26 = vpop.f32.mrb[25].mxu1 }
 0x5d5   : > { %v2130_v30 = vsel %vm637_vm2, %v2122_v25, -inf }
 0x5d6   : > { %2131 = vmax.xlane.f32.xlu1 %v2130_v30  ;;  %v2116_v41 = vpop.f32.mrb[26].mxu1 }
 0x5d7   : > { %v2123_v32 = vmul.f32 0.35355338, %v2116_v41  ;;  %v5523_v35 = vpop.f32.mrb[27].mxu1 }
 0x5d9   : > { %v2133_v36 = vsel %vm637_vm2, %v2123_v32, -inf }
 0x5da   : > { %2134 = vmax.xlane.f32.xlu1 %v2133_v36 }
 0x65b   : > { %v2126_v37 = vpop.xlane.xlu1 %2125 }
 0x65c   : > { %v2136_v38 = vsub.f32 %v2120_v1, %v2126_v37 }
 0x65e   : > { %v2140_v10 = vmul.f32 1.442695, %v2136_v38 }
 0x65f   : > { %v2129_v42 = vpop.xlane.xlu0 %2128 }
 0x660   : > { %5844 = vpow2.f32 %v2140_v10  ;;  %v2137_v49 = vsub.f32 %v2121_v8, %v2129_v42 }
 0x662   : > { %v2142_v50 = vmul.f32 1.442695, %v2137_v49 }
 0x663   : > { %v2132_v51 = vpop.xlane.xlu1 %2131 }
 0x664   : > { %5846 = vpow2.f32 %v2142_v50  ;;  %v2138_v52 = vsub.f32 %v2122_v25, %v2132_v51 }
 0x666   : > { %v2144_v53 = vmul.f32 1.442695, %v2138_v52 }
 0x667   : > { %v2135_v54 = vpop.xlane.xlu1 %2134 }
 0x668   : > { %5848 = vpow2.f32 %v2144_v53  ;;  %v2139_v55 = vsub.f32 %v2123_v32, %v2135_v54 }
 0x66a   : > { %v5845_v56 = vpop.eup %5844  ;;  %v2146_v61 = vmul.f32 1.442695, %v2139_v55  ;;  %v1697_v55 = vadd.f32 %v6260_v28, %v6197_v5 }
 0x66b   : > { %v2148_v2 = vsel %vm637_vm2, %v5845_v56, 0.0 }
 0x66c   : > { %5850 = vpow2.f32 %v2146_v61  ;;  %2149 = vadd.xlane.f32.xlu0 %v2148_v2 }
 0x66e   : > { %v5847_v3 = vpop.eup %5846 }
 0x66f   : > { %v2151_v1 = vsel %vm637_vm2, %v5847_v3, 0.0 }
 0x670   : > { %2152 = vadd.xlane.f32.xlu1 %v2151_v1 }
 0x672   : > { %v5849_v4 = vpop.eup %5848 }
 0x673   : > { %v2154_v8 = vsel %vm637_vm2, %v5849_v4, 0.0 }
 0x674   : > { %2155 = vadd.xlane.f32.xlu0 %v2154_v8 }
 0x676   : > { %v5851_v12 = vpop.eup %5850 }
 0x677   : > { %v2157_v14 = vsel %vm637_vm2, %v5851_v12, 0.0 }
 0x678   : > { %2158 = vadd.xlane.f32.xlu1 %v2157_v14 }
 0x68a   : > { %2729 = vrot.lane.b32.xlu0 %v6017_v6, %s5937_s24  ;;  %v1692_v6 = vadd.f32 %v6263_v29, %v6195_v62 }
 0x6f9   : > { %v2150_v23 = vpop.xlane.xlu0 %2149 }
 0x6fa   : > { %5852 = vrcp.f32 %v2150_v23 }
 0x6fd   : > { %v2153_v25 = vpop.xlane.xlu1 %2152 }
 0x6fe   : > { %5854 = vrcp.f32 %v2153_v25 }
 0x701   : > { %v2156_v26 = vpop.xlane.xlu0 %2155 }
 0x702   : > { %5856 = vrcp.f32 %v2156_v26 }
 0x704   : > { %v5853_v30 = vpop.eup %5852 }
 0x705   : > { %v2164_v41 = vmul.f32 %v5853_v30, %v2150_v23  ;;  %v2159_v32 = vpop.xlane.xlu1 %2158 }
 0x706   : > { %5858 = vrcp.f32 %v2159_v32 }
 0x707   : > { %v2168_v35 = vsub.f32 2.0, %v2164_v41 }
 0x708   : > { %v5855_v36 = vpop.eup %5854 }
 0x709   : > { %v2172_v37 = vmul.f32 %v5853_v30, %v2168_v35  ;;  %v2165_v38 = vmul.f32 %v5855_v36, %v2153_v25 }
 0x70b   : > { %v2176_v10 = vmul.f32 %v5845_v56, %v2172_v37  ;;  %v2169_v42 = vsub.f32 2.0, %v2165_v38  ;;  %v2730_v56 = vpop.permute.xlu0 %2729 }
 0x70c   : > { %v5857_v49 = vpop.eup %5856 }
 0x70d   : > { %v2173_v50 = vmul.f32 %v5855_v36, %v2169_v42  ;;  %v2166_v51 = vmul.f32 %v5857_v49, %v2156_v26  ;;  %5527 = vmatmul.mubr.msk.f32.vlgmr.msra.gmra.mrb[24].mxu0 %vm637_vm2, %v2176_v10 }
 0x70e   : > { %5535 = vmatpush3.xpose.msk.msra.mxu0 %vm637_vm2, %v1692_v6  ;;  %5536 = vmatprep.mubr.msk.f32.mxu0 %vm5935_vm1, %v5934_v19 }
 0x70f   : > { %v2177_v52 = vmul.f32 %v5847_v3, %v2173_v50  ;;  %v2170_v53 = vsub.f32 2.0, %v2166_v51 }
 0x710   : > { %v5859_v54 = vpop.eup %5858 }
 0x711   : > { %v2174_v61 = vmul.f32 %v5857_v49, %v2170_v53  ;;  %v2167_v2 = vmul.f32 %v5859_v54, %v2159_v32  ;;  %5532 = vmatmul.mubr.msk.f32.vlgmr.msra.gmra.mrb[28].mxu1 %vm637_vm2, %v2177_v52 }
 0x712   : > { %5540 = vmatpush3.xpose.msk.msra.mxu1 %vm637_vm2, %v1697_v55  ;;  %5541 = vmatprep.mubr.msk.f32.mxu1 %vm5935_vm1, %v5934_v19 }
 0x713   : > { %v2178_v29 = vmul.f32 %v5849_v4, %v2174_v61  ;;  %v2171_v1 = vsub.f32 2.0, %v2167_v2  ;;  %5558 = vmatprep.subr.msk.mxu1 %vm344_vm0, %v2730_v56 }
 0x715   : > { %v2175_v3 = vmul.f32 %v5859_v54, %v2171_v1  ;;  %5537 = vmatmul.mubr.msk.f32.vlgmr.msra.gmra.mrb[26].mxu0 %vm637_vm2, %v2178_v29 }
 0x716   : > { %5552 = vmatprep.mubr.msk.f32.mxu0 %vm344_vm0, %v6252_v63 }
 0x717   : > { %v2179_v28 = vmul.f32 %v5851_v12, %v2175_v3 }
 0x719   : > { %5542 = vmatmul.mubr.msk.f32.vlgmr.msra.gmra.mrb[30].mxu1 %vm637_vm2, %v2179_v28 }
 0x71a   : > { %5559 = vmatpush3.xpose.msk.msra.mxu1 %vm344_vm0, %v2730_v56  ;;  %5560 = vmatprep.mubr.msk.f32.mxu1 %vm344_vm0, %v5990_v0 }
 0x71b   : > { %5598 = vmatprep.subr.mxu1 %v5934_v19 }
 0x71d   : > { %5561 = vmatmul.mubr.msk.f32.vlgmr.msra.gmra.mrb[32].mxu1 %vm344_vm0, %v6026_v7 }
 0x71e   : > { %5563 = vmatprep.mubr.msk.f32.mxu1 %vm344_vm0, %v6034_v9 }
 0x721   : > { %5564 = vmatmul.mubr.msk.f32.gmra.mrb[34].mxu1 %vm344_vm0, %v6050_v11 }
 0x722   : > { %5566 = vmatprep.mubr.msk.f32.mxu1 %vm344_vm0, %v6058_v13 }
 0x725   : > { %5567 = vmatmul.mubr.msk.f32.gmra.mrb[36].mxu1 %vm344_vm0, %v6070_v15 }
 0x726   : > { %5569 = vmatprep.mubr.msk.f32.mxu1 %vm344_vm0, %v6075_v16 }
 0x729   : > { %5570 = vmatmul.mubr.msk.f32.gmra.mrb[38].mxu1 %vm344_vm0, %v6084_v17 }
 0x72a   : > { %5572 = vmatprep.mubr.msk.f32.mxu1 %vm344_vm0, %v6125_v39 }
 0x72d   : > { %5573 = vmatmul.mubr.msk.f32.gmra.mrb[40].mxu1 %vm344_vm0, %v6130_v40 }
 0x72e   : > { %5575 = vmatprep.mubr.msk.f32.mxu1 %vm344_vm0, %v6091_v18 }
 0x731   : > { %5576 = vmatmul.mubr.msk.f32.gmra.mrb[42].mxu1 %vm344_vm0, %v6099_v20 }
 0x732   : > { %5600 = vmatprep.mubr.msk.f32.mxu1 %vm5935_vm1, %v5934_v19 }
 0x7e0   : > { %v2252_v0 = vpop.f32.mrb[24].mxu0 }
 0x7e1   : > { %v5528_v7 = vpop.f32.mrb[25].mxu0 }
 0x7e4   : > { %v2328_v9 = vpop.f32.mrb[28].mxu1 }
 0x7e5   : > { %v5786_v11 = vpack.i.bf16 %v2328_v9, %v2252_v0  ;;  %v5533_v13 = vpop.f32.mrb[29].mxu1 }
 0x7e7   : > { %5787 = vxpose.xlu1.b32.start.end [1/1] (short) (narrow) %v5786_v11, 8 }
 0x7e8   : > { %v2404_v15 = vpop.f32.mrb[26].mxu0 }
 0x7e9   : > { %v5538_v16 = vpop.f32.mrb[27].mxu0 }
 0x7ec   : > { %v2480_v17 = vpop.f32.mrb[30].mxu1 }
 0x7ed   : > { %v5793_v39 = vpack.i.bf16 %v2480_v17, %v2404_v15  ;;  %v5543_v40 = vpop.f32.mrb[31].mxu1 }
 0x7ef   : > { %5794 = vxpose.xlu0.b32.start.end [1/1] (short) (narrow) %v5793_v39, 8 }
 0x7f0   : > { %v5562_v4 = vpop.f32.mrb[32].mxu1 }
 0x7f1   : > { %v2805_v18 = vadd.f32 %v5562_v4, %v6108_v22  ;;  %v2799_v8 = vpop.f32.mrb[33].mxu1 }
 0x7f2   : > { %v2800_v20 = vadd.f32 %v2799_v8, %v6106_v21 }
 0x7f3   : > { %2890 = vxpose.xlu1.b32.start.end [1/1] (short) (narrow) %v2805_v18, 8 }
 0x7f4   : > { %v5565_v12 = vpop.f32.mrb[34].mxu1  ;;  %2858 = vxpose.xlu0.b32.start.end [1/1] (short) (narrow) %v2800_v20, 8 }
 0x7f5   : > { %v2815_v14 = vadd.f32 %v5565_v12, %v6115_v31  ;;  %v2809_v23 = vpop.f32.mrb[35].mxu1 }
 0x7f6   : > { %v2810_v25 = vadd.f32 %v2809_v23, %v6110_v24 }
 0x7f7   : > { %2954 = vxpose.xlu1.b32.start.end [1/1] (short) (narrow) %v2815_v14, 8 }
 0x7f8   : > { %v5568_v26 = vpop.f32.mrb[36].mxu1  ;;  %2922 = vxpose.xlu0.b32.start.end [1/1] (short) (narrow) %v2810_v25, 8 }
 0x7f9   : > { %v2819_v30 = vpop.f32.mrb[37].mxu1  ;;  %v2825_v61 = vadd.f32 %v5568_v26, %v6142_v43 }
 0x7fa   : > { %v2820_v55 = vadd.f32 %v2819_v30, %v6118_v34 }
 0x7fc   : > { %v5571_v41 = vpop.f32.mrb[38].mxu1 }
 0x7fd   : > { %v2829_v32 = vpop.f32.mrb[39].mxu1  ;;  %v2835_v3 = vadd.f32 %v5571_v41, %v6146_v45 }
 0x7fe   : > { %v2830_v29 = vadd.f32 %v2829_v32, %v6144_v44 }
 0x800   : > { %v5574_v35 = vpop.f32.mrb[40].mxu1 }
 0x801   : > { %v2839_v36 = vpop.f32.mrb[41].mxu1  ;;  %v2845_v0 = vadd.f32 %v5574_v35, %v6203_v27 }
 0x802   : > { %v2840_v37 = vadd.f32 %v2839_v36, %v6175_v33 }
 0x804   : > { %v6381_v38 = vpop.f32.mrb[42].mxu1  ;;  %5599 = vmatpush3.xpose.msk.msra.mxu1 %vm637_vm2, %v2840_v37 }
 0x805   : > { %v6384_v10 = vpop.f32.mrb[43].mxu1  ;;  %5608 = vmatprep.subr.mxu1 %v5934_v19 }
 0x867   : > { %v5788_v42 = vpop.trf.xlu1 }
 0x868   : > { %v5792_v49 = vunpack.i.h.bf16 %v5788_v42  ;;  %v5789_v6 = vunpack.i.l.bf16 %v5788_v42 }
 0x86a   : > { %v5714_v50 = vpack.c.bf16 %v5792_v49, %v5789_v6 }
 0x86c   : > { %5715 = vmatprep.subr.bf16.mxu0 %v5714_v50 }
 0x86d   : > { %5717 = vmatpush3.bf16.msra.mxu0 %v5714_v50 }
 0x86f   : > { %v5795_v51 = vpop.trf.xlu0 }
 0x870   : > { %v5799_v52 = vunpack.i.h.bf16 %v5795_v51  ;;  %v5796_v53 = vunpack.i.l.bf16 %v5795_v51 }
 0x872   : > { %v5718_v54 = vpack.c.bf16 %v5799_v52, %v5796_v53 }
 0x873   : > { %v2906_v2 = vpop.trf.xlu1 }
 0x874   : > { %5719 = vmatprep.subr.bf16.mxu0 %v5718_v54  ;;  %v2874_v56 = vpop.trf.xlu0 }
 0x875   : > { %5721 = vmatpush3.bf16.msra.mxu0 %v5718_v54 }
 0x876   : > { %5578 = vmatprep.subr.mxu0 %v5934_v19 }
 0x877   : > { %v2970_v28 = vpop.trf.xlu1 }
 0x878   : > { %5553 = vmatmul.mubr.msk.f32.vlgmr.msra.gmra.mrb[28].mxu0 %vm344_vm0, %v6269_v46  ;;  %v2938_v1 = vpop.trf.xlu0 }
 0x879   : > { %5579 = vmatpush3.msra.mxu0 %v2820_v55  ;;  %5555 = vmatprep.mubr.msk.f32.mxu0 %vm344_vm0, %v6275_v47 }
 0x87a   : > { %5583 = vmatprep.subr.mxu0 %v5934_v19 }
 0x87c   : > { %5556 = vmatmul.mubr.msk.f32.gmra.mrb[30].mxu0 %vm344_vm0, %v6285_v48 }
 0x87d   : > { %5580 = vmatprep.mubr.msk.f32.mxu0 %vm5935_vm1, %v5934_v19 }
 0x880   : > { %5581 = vmatmul.mubr.msk.f32.vlgmr.msra.gmra.mrb[32].mxu0 %vm637_vm2, %v2874_v56 }
 0x881   : > { %5584 = vmatpush3.msra.mxu0 %v2825_v61  ;;  %5585 = vmatprep.mubr.msk.f32.mxu0 %vm5935_vm1, %v5934_v19 }
 0x882   : > { %5588 = vmatprep.subr.mxu0 %v5934_v19 }
 0x884   : > { %5586 = vmatmul.mubr.msk.f32.vlgmr.msra.gmra.mrb[34].mxu0 %vm637_vm2, %v2906_v2 }
 0x885   : > { %5589 = vmatpush3.msra.mxu0 %v2830_v29  ;;  %5590 = vmatprep.mubr.msk.f32.mxu0 %vm5935_vm1, %v5934_v19 }
 0x886   : > { %5593 = vmatprep.subr.mxu0 %v5934_v19 }
 0x888   : > { %5591 = vmatmul.mubr.msk.f32.vlgmr.msra.gmra.mrb[36].mxu0 %vm637_vm2, %v2938_v1 }
 0x889   : > { %5594 = vmatpush3.msra.mxu0 %v2835_v3  ;;  %5595 = vmatprep.mubr.msk.f32.mxu0 %vm5935_vm1, %v5934_v19 }
 0x88a   : > { %5603 = vmatprep.subr.mxu0 %v5934_v19 }
 0x88c   : > { %5596 = vmatmul.mubr.msk.f32.vlgmr.msra.gmra.mrb[38].mxu0 %vm637_vm2, %v2970_v28 }
 0x88d   : > { %5605 = vmatprep.mubr.msk.f32.mxu0 %vm5935_vm1, %v5934_v19 }
 0x890   : > { %5604 = vmatpush3.xpose.msk.msra.mxu0 %vm637_vm2, %v2845_v0  ;;  %v5892_v0 = vld [vmem:[%s6011_s8] sm:$0xff] }
 0x891   : > { %5613 = vmatprep.subr.mxu0 %v5934_v19 }
 0x94b   : > { %v6419_v7 = vpop.f32.mrb[28].mxu0 }
 0x94c   : > { %v6421_v9 = vpop.f32.mrb[29].mxu0 }
 0x94f   : > { %v6423_v11 = vpop.f32.mrb[30].mxu0 }
 0x950   : > { %v6425_v13 = vpop.f32.mrb[31].mxu0 }
 0x953   : > { %v3055_v15 = vpop.f32.mrb[32].mxu0 }
 0x954   : > { %v3278_v16 = vmul.f32 0.35355338, %v3055_v15  ;;  %v5582_v17 = vpop.f32.mrb[33].mxu0 }
 0x956   : > { %v3282_v39 = vsel %vm637_vm2, %v3278_v16, -inf }
 0x957   : > { %3283 = vmax.xlane.f32.xlu0 %v3282_v39  ;;  %v3128_v40 = vpop.f32.mrb[34].mxu0 }
 0x958   : > { %v3279_v4 = vmul.f32 0.35355338, %v3128_v40  ;;  %v5587_v18 = vpop.f32.mrb[35].mxu0 }
 0x95a   : > { %v3285_v8 = vsel %vm637_vm2, %v3279_v4, -inf }
 0x95b   : > { %3286 = vmax.xlane.f32.xlu1 %v3285_v8  ;;  %v3201_v20 = vpop.f32.mrb[36].mxu0 }
 0x95c   : > { %v3280_v12 = vmul.f32 0.35355338, %v3201_v20  ;;  %v5592_v14 = vpop.f32.mrb[37].mxu0 }
 0x95e   : > { %v3288_v23 = vsel %vm637_vm2, %v3280_v12, -inf }
 0x95f   : > { %3289 = vmax.xlane.f32.xlu1 %v3288_v23  ;;  %v3274_v25 = vpop.f32.mrb[38].mxu0 }
 0x960   : > { %v3281_v26 = vmul.f32 0.35355338, %v3274_v25  ;;  %v5597_v30 = vpop.f32.mrb[39].mxu0 }
 0x962   : > { %v3291_v41 = vsel %vm637_vm2, %v3281_v26, -inf }
 0x963   : > { %3292 = vmax.xlane.f32.xlu1 %v3291_v41 }
 0x9e4   : > { %v3284_v32 = vpop.xlane.xlu0 %3283 }
 0x9e5   : > { %v3294_v35 = vsub.f32 %v3278_v16, %v3284_v32 }
 0x9e7   : > { %v3298_v36 = vmul.f32 1.442695, %v3294_v35 }
 0x9e8   : > { %v3287_v37 = vpop.xlane.xlu1 %3286 }
 0x9e9   : > { %5860 = vpow2.f32 %v3298_v36  ;;  %v3295_v42 = vsub.f32 %v3279_v4, %v3287_v37  ;;  %v2855_v37 = vadd.f32 %v6381_v38, %v6197_v5 }
 0x9eb   : > { %v3300_v49 = vmul.f32 1.442695, %v3295_v42 }
 0x9ec   : > { %v3290_v6 = vpop.xlane.xlu1 %3289 }
 0x9ed   : > { %5862 = vpow2.f32 %v3300_v49  ;;  %v3296_v50 = vsub.f32 %v3280_v12, %v3290_v6 }
 0x9ef   : > { %v3302_v51 = vmul.f32 1.442695, %v3296_v50 }
 0x9f0   : > { %v3293_v52 = vpop.xlane.xlu1 %3292 }
 0x9f1   : > { %5864 = vpow2.f32 %v3302_v51  ;;  %v3297_v53 = vsub.f32 %v3281_v26, %v3293_v52  ;;  %v2850_v26 = vadd.f32 %v6384_v10, %v6195_v62  ;;  %v5893_v52 = vld [vmem:[%s6638_s1] sm:$0xff] }
 0x9f3   : > { %v5861_v54 = vpop.eup %5860  ;;  %v3304_v55 = vmul.f32 1.442695, %v3297_v53  ;;  %v5894_v53 = vld [vmem:[%s6638_s1 + $0x8] sm:$0xff] }
 0x9f4   : > { %v3306_v56 = vsel %vm637_vm2, %v5861_v54, 0.0 }
 0x9f5   : > { %5866 = vpow2.f32 %v3304_v55  ;;  %3307 = vadd.xlane.f32.xlu0 %v3306_v56  ;;  %v5897_v55 = vld [vmem:[%s6638_s1 + $0x20] sm:$0xff]  ;;  %v5898_v56 = vld [vmem:[%s6638_s1 + $0x28] sm:$0xff] }
 0x9f7   : > { %v5863_v61 = vpop.eup %5862 }
 0x9f8   : > { %v3309_v2 = vsel %vm637_vm2, %v5863_v61, 0.0 }
 0x9f9   : > { %3310 = vadd.xlane.f32.xlu1 %v3309_v2  ;;  %v5900_v2 = vld [vmem:[%s6638_s1 + $0x38] sm:$0xff] }
 0x9fb   : > { %v5865_v29 = vpop.eup %5864 }
 0x9fc   : > { %v3312_v1 = vsel %vm637_vm2, %v5865_v29, 0.0 }
 0x9fd   : > { %3313 = vadd.xlane.f32.xlu0 %v3312_v1  ;;  %v5902_v1 = vld [vmem:[%s6638_s1 + $0x48] sm:$0xff] }
 0x9ff   : > { %v5867_v3 = vpop.eup %5866 }
 0xa00   : > { %v3315_v28 = vsel %vm637_vm2, %v5867_v3, 0.0 }
 0xa01   : > { %3316 = vadd.xlane.f32.xlu1 %v3315_v28  ;;  %v5904_v28 = vld [vmem:[%s6638_s1 + $0x58] sm:$0xff] }
 0xa13   : > { %3887 = vrot.lane.b32.xlu0 %v5892_v0, %s5938_s25 }
 0xa82   : > { %v3308_v15 = vpop.xlane.xlu0 %3307 }
 0xa83   : > { %5868 = vrcp.f32 %v3308_v15 }
 0xa86   : > { %v3311_v16 = vpop.xlane.xlu1 %3310 }
 0xa87   : > { %5870 = vrcp.f32 %v3311_v16 }
 0xa8a   : > { %v3314_v17 = vpop.xlane.xlu0 %3313 }
 0xa8b   : > { %5872 = vrcp.f32 %v3314_v17 }
 0xa8d   : > { %v5869_v39 = vpop.eup %5868 }
 0xa8e   : > { %v3322_v40 = vmul.f32 %v5869_v39, %v3308_v15  ;;  %v3317_v4 = vpop.xlane.xlu1 %3316  ;;  %v3888_v42 = vpop.permute.xlu0 %3887 }
 0xa8f   : > { %5874 = vrcp.f32 %v3317_v4 }
 0xa90   : > { %v3326_v18 = vsub.f32 2.0, %v3322_v40 }
 0xa91   : > { %v5871_v8 = vpop.eup %5870 }
 0xa92   : > { %v3330_v20 = vmul.f32 %v5869_v39, %v3326_v18  ;;  %v3323_v12 = vmul.f32 %v5871_v8, %v3311_v16 }
 0xa94   : > { %v3334_v14 = vmul.f32 %v5861_v54, %v3330_v20  ;;  %v3327_v23 = vsub.f32 2.0, %v3323_v12  ;;  %v5896_v54 = vld [vmem:[%s6638_s1 + $0x18] sm:$0xff] }
 0xa95   : > { %v5873_v25 = vpop.eup %5872 }
 0xa96   : > { %v3331_v30 = vmul.f32 %v5871_v8, %v3327_v23  ;;  %v3324_v41 = vmul.f32 %v5873_v25, %v3314_v17  ;;  %5601 = vmatmul.mubr.msk.f32.vlgmr.msra.gmra.mrb[44].mxu1 %vm637_vm2, %v3334_v14 }
 0xa97   : > { %5609 = vmatpush3.xpose.msk.msra.mxu1 %vm637_vm2, %v2850_v26  ;;  %5610 = vmatprep.mubr.msk.f32.mxu1 %vm5935_vm1, %v5934_v19 }
 0xa98   : > { %v3335_v32 = vmul.f32 %v5863_v61, %v3331_v30  ;;  %v3328_v35 = vsub.f32 2.0, %v3324_v41  ;;  %v5899_v61 = vld [vmem:[%s6638_s1 + $0x30] sm:$0xff] }
 0xa99   : > { %v5875_v36 = vpop.eup %5874 }
 0xa9a   : > { %v3332_v49 = vmul.f32 %v5873_v25, %v3328_v35  ;;  %v3325_v6 = vmul.f32 %v5875_v36, %v3317_v4  ;;  %5606 = vmatmul.mubr.msk.f32.vlgmr.msra.gmra.mrb[40].mxu0 %vm637_vm2, %v3335_v32 }
 0xa9b   : > { %5614 = vmatpush3.xpose.msk.msra.mxu0 %vm637_vm2, %v2855_v37  ;;  %5615 = vmatprep.mubr.msk.f32.mxu0 %vm5935_vm1, %v5934_v19 }
 0xa9c   : > { %v3336_v10 = vmul.f32 %v5865_v29, %v3332_v49  ;;  %v3329_v50 = vsub.f32 2.0, %v3325_v6  ;;  %5632 = vmatprep.subr.msk.mxu0 %vm344_vm0, %v3888_v42  ;;  %v5901_v29 = vld [vmem:[%s6638_s1 + $0x40] sm:$0xff] }
 0xa9e   : > { %v3333_v51 = vmul.f32 %v5875_v36, %v3329_v50  ;;  %5611 = vmatmul.mubr.msk.f32.vlgmr.msra.gmra.mrb[46].mxu1 %vm637_vm2, %v3336_v10 }
 0xa9f   : > { %5626 = vmatprep.mubr.msk.f32.mxu1 %vm344_vm0, %v6252_v63  ;;  %v5895_v63 = vld [vmem:[%s6638_s1 + $0x10] sm:$0xff] }
 0xaa0   : > { %v3337_v38 = vmul.f32 %v5867_v3, %v3333_v51  ;;  %v5903_v3 = vld [vmem:[%s6638_s1 + $0x50] sm:$0xff] }
 0xaa2   : > { %5616 = vmatmul.mubr.msk.f32.vlgmr.msra.gmra.mrb[42].mxu0 %vm637_vm2, %v3337_v38 }
 0xaa3   : > { %5633 = vmatpush3.xpose.msk.msra.mxu0 %vm344_vm0, %v3888_v42  ;;  %5634 = vmatprep.mubr.msk.f32.mxu0 %vm344_vm0, %v5893_v52 }
 0xaa4   : > { %5672 = vmatprep.subr.mxu0 %v5934_v19 }
 0xaa6   : > { %5635 = vmatmul.mubr.msk.f32.vlgmr.msra.gmra.mrb[44].mxu0 %vm344_vm0, %v5894_v53 }
 0xaa7   : > { %5637 = vmatprep.mubr.msk.f32.mxu0 %vm344_vm0, %v5895_v63 }
 0xaaa   : > { %5638 = vmatmul.mubr.msk.f32.gmra.mrb[46].mxu0 %vm344_vm0, %v5896_v54 }
 0xaab   : > { %5640 = vmatprep.mubr.msk.f32.mxu0 %vm344_vm0, %v5897_v55 }
 0xaae   : > { %5641 = vmatmul.mubr.msk.f32.gmra.mrb[48].mxu0 %vm344_vm0, %v5898_v56 }
 0xaaf   : > { %5643 = vmatprep.mubr.msk.f32.mxu0 %vm344_vm0, %v5899_v61 }
 0xab2   : > { %5644 = vmatmul.mubr.msk.f32.gmra.mrb[50].mxu0 %vm344_vm0, %v5900_v2 }
 0xab3   : > { %5646 = vmatprep.mubr.msk.f32.mxu0 %vm344_vm0, %v5901_v29 }
 0xab6   : > { %5647 = vmatmul.mubr.msk.f32.gmra.mrb[52].mxu0 %vm344_vm0, %v5902_v1 }
 0xab7   : > { %5649 = vmatprep.mubr.msk.f32.mxu0 %vm344_vm0, %v5903_v3 }
 0xaba   : > { %5650 = vmatmul.mubr.msk.f32.gmra.mrb[54].mxu0 %vm344_vm0, %v5904_v28 }
 0xabb   : > { %5674 = vmatprep.mubr.msk.f32.mxu0 %vm5935_vm1, %v5934_v19 }
 0xb69   : > { %v3410_v0 = vpop.f32.mrb[44].mxu1 }
 0xb6a   : > { %v5602_v15 = vpop.f32.mrb[45].mxu1 }
 0xb6d   : > { %v3486_v16 = vpop.f32.mrb[40].mxu0 }
 0xb6e   : > { %v5800_v17 = vpack.i.bf16 %v3486_v16, %v3410_v0  ;;  %v5607_v39 = vpop.f32.mrb[41].mxu0 }
 0xb70   : > { %5801 = vxpose.xlu1.b32.start.end [1/1] (short) (narrow) %v5800_v17, 8 }
 0xb71   : > { %v3562_v40 = vpop.f32.mrb[46].mxu1 }
 0xb72   : > { %v5612_v4 = vpop.f32.mrb[47].mxu1 }
 0xb75   : > { %v3638_v18 = vpop.f32.mrb[42].mxu0 }
 0xb76   : > { %v5807_v8 = vpack.i.bf16 %v3638_v18, %v3562_v40  ;;  %v5617_v20 = vpop.f32.mrb[43].mxu0 }
 0xb78   : > { %5808 = vxpose.xlu0.b32.start.end [1/1] (short) (narrow) %v5807_v8, 8 }
 0xb79   : > { %v5636_v12 = vpop.f32.mrb[44].mxu0 }
 0xb7a   : > { %v3963_v14 = vadd.f32 %v5636_v12, %v6108_v22  ;;  %v3957_v23 = vpop.f32.mrb[45].mxu0 }
 0xb7b   : > { %v3958_v25 = vadd.f32 %v3957_v23, %v6106_v21 }
 0xb7c   : > { %4048 = vxpose.xlu1.b32.start.end [1/1] (short) (narrow) %v3963_v14, 8 }
 0xb7d   : > { %v5639_v26 = vpop.f32.mrb[46].mxu0  ;;  %4016 = vxpose.xlu0.b32.start.end [1/1] (short) (narrow) %v3958_v25, 8 }
 0xb7e   : > { %v3973_v30 = vadd.f32 %v5639_v26, %v6115_v31  ;;  %v3967_v41 = vpop.f32.mrb[47].mxu0 }
 0xb7f   : > { %v3968_v32 = vadd.f32 %v3967_v41, %v6110_v24 }
 0xb80   : > { %4112 = vxpose.xlu1.b32.start.end [1/1] (short) (narrow) %v3973_v30, 8 }
 0xb81   : > { %v5642_v35 = vpop.f32.mrb[48].mxu0  ;;  %4080 = vxpose.xlu0.b32.start.end [1/1] (short) (narrow) %v3968_v32, 8 }
 0xb82   : > { %v3977_v36 = vpop.f32.mrb[49].mxu0  ;;  %v3983_v55 = vadd.f32 %v5642_v35, %v6142_v43 }
 0xb85   : > { %v5645_v37 = vpop.f32.mrb[50].mxu0 }
 0xb86   : > { %v3987_v42 = vpop.f32.mrb[51].mxu0  ;;  %v3993_v43 = vadd.f32 %v5645_v37, %v6146_v45 }
 0xb89   : > { %v5648_v49 = vpop.f32.mrb[52].mxu0 }
 0xb8a   : > { %v3997_v6 = vpop.f32.mrb[53].mxu0 }
 0xb8b   : > { %v3998_v22 = vadd.f32 %v3997_v6, %v6175_v33  ;;  %v3978_v33 = vadd.f32 %v3977_v36, %v6118_v34 }
 0xb8d   : > { %v6511_v10 = vpop.f32.mrb[54].mxu0  ;;  %5673 = vmatpush3.xpose.msk.msra.mxu0 %vm637_vm2, %v3998_v22 }
 0xb8e   : > { %v6514_v21 = vpop.f32.mrb[55].mxu0  ;;  %5682 = vmatprep.subr.mxu0 %v5934_v19 }
 0xbf0   : > { %v5802_v31 = vpop.trf.xlu1 }
 0xbf1   : > { %v5806_v24 = vunpack.i.h.bf16 %v5802_v31  ;;  %v5803_v50 = vunpack.i.l.bf16 %v5802_v31 }
 0xbf3   : > { %v5722_v51 = vpack.c.bf16 %v5806_v24, %v5803_v50 }
 0xbf5   : > { %5723 = vmatprep.subr.bf16.mxu1 %v5722_v51 }
 0xbf6   : > { %5725 = vmatpush3.bf16.msra.mxu1 %v5722_v51 }
 0xbf8   : > { %v5809_v38 = vpop.trf.xlu0 }
 0xbf9   : > { %v5813_v52 = vunpack.i.h.bf16 %v5809_v38  ;;  %v5810_v53 = vunpack.i.l.bf16 %v5809_v38 }
 0xbfb   : > { %v5726_v63 = vpack.c.bf16 %v5813_v52, %v5810_v53 }
 0xbfc   : > { %v4064_v34 = vpop.trf.xlu1 }
 0xbfd   : > { %5727 = vmatprep.subr.bf16.mxu1 %v5726_v63  ;;  %v4032_v54 = vpop.trf.xlu0 }
 0xbfe   : > { %5729 = vmatpush3.bf16.msra.mxu1 %v5726_v63 }
 0xbff   : > { %5652 = vmatprep.subr.mxu1 %v5934_v19 }
 0xc01   : > { %5627 = vmatmul.mubr.msk.f32.vlgmr.msra.gmra.mrb[48].mxu1 %vm344_vm0, %v6269_v46  ;;  %v3988_v46 = vadd.f32 %v3987_v42, %v6144_v44  ;;  %v4003_v44 = vadd.f32 %v5648_v49, %v6203_v27 }
 0xc02   : > { %5653 = vmatpush3.msra.mxu1 %v3978_v33  ;;  %5629 = vmatprep.mubr.msk.f32.mxu1 %vm344_vm0, %v6275_v47  ;;  %v4096_v47 = vpop.trf.xlu0 }
 0xc03   : > { %5657 = vmatprep.subr.mxu1 %v5934_v19 }
 0xc05   : > { %5630 = vmatmul.mubr.msk.f32.gmra.mrb[50].mxu1 %vm344_vm0, %v6285_v48  ;;  %v4128_v48 = vpop.trf.xlu1 }
 0xc06   : > { %5654 = vmatprep.mubr.msk.f32.mxu1 %vm5935_vm1, %v5934_v19 }
 0xc09   : > { %5655 = vmatmul.mubr.msk.f32.vlgmr.msra.gmra.mrb[52].mxu1 %vm637_vm2, %v4032_v54 }
 0xc0a   : > { %5658 = vmatpush3.msra.mxu1 %v3983_v55  ;;  %5659 = vmatprep.mubr.msk.f32.mxu1 %vm5935_vm1, %v5934_v19 }
 0xc0b   : > { %5662 = vmatprep.subr.mxu1 %v5934_v19 }
 0xc0d   : > { %5660 = vmatmul.mubr.msk.f32.vlgmr.msra.gmra.mrb[54].mxu1 %vm637_vm2, %v4064_v34 }
 0xc0e   : > { %5663 = vmatpush3.msra.mxu1 %v3988_v46  ;;  %5664 = vmatprep.mubr.msk.f32.mxu1 %vm5935_vm1, %v5934_v19 }
 0xc0f   : > { %5667 = vmatprep.subr.mxu1 %v5934_v19 }
 0xc11   : > { %5665 = vmatmul.mubr.msk.f32.vlgmr.msra.gmra.mrb[56].mxu1 %vm637_vm2, %v4096_v47 }
 0xc12   : > { %5668 = vmatpush3.msra.mxu1 %v3993_v43  ;;  %5669 = vmatprep.mubr.msk.f32.mxu1 %vm5935_vm1, %v5934_v19 }
 0xc13   : > { %5677 = vmatprep.subr.mxu1 %v5934_v19 }
 0xc15   : > { %5670 = vmatmul.mubr.msk.f32.vlgmr.msra.gmra.mrb[58].mxu1 %vm637_vm2, %v4128_v48 }
 0xc16   : > { %5679 = vmatprep.mubr.msk.f32.mxu1 %vm5935_vm1, %v5934_v19 }
 0xc19   : > { %5678 = vmatpush3.xpose.msk.msra.mxu1 %vm637_vm2, %v4003_v44 }
 0xc1a   : > { %5687 = vmatprep.subr.mxu1 %v5934_v19 }
 0xcd4   : > { %v6549_v45 = vpop.f32.mrb[48].mxu1 }
 0xcd5   : > { %v6551_v56 = vpop.f32.mrb[49].mxu1 }
 0xcd8   : > { %v6553_v61 = vpop.f32.mrb[50].mxu1 }
 0xcd9   : > { %v6555_v2 = vpop.f32.mrb[51].mxu1 }
 0xcdc   : > { %v4213_v29 = vpop.f32.mrb[52].mxu1 }
 0xcdd   : > { %v4436_v1 = vmul.f32 0.35355338, %v4213_v29  ;;  %v5656_v3 = vpop.f32.mrb[53].mxu1 }
 0xcde   : > { %v4008_v3 = vadd.f32 %v6514_v21, %v6195_v62 }
 0xcdf   : > { %v4440_v28 = vsel %vm637_vm2, %v4436_v1, -inf }
 0xce0   : > { %4441 = vmax.xlane.f32.xlu0 %v4440_v28  ;;  %v4286_v0 = vpop.f32.mrb[54].mxu1 }
 0xce1   : > { %v4437_v27 = vmul.f32 0.35355338, %v4286_v0  ;;  %v5661_v15 = vpop.f32.mrb[55].mxu1 }
 0xce3   : > { %v4443_v16 = vsel %vm637_vm2, %v4437_v27, -inf }
 0xce4   : > { %4444 = vmax.xlane.f32.xlu1 %v4443_v16  ;;  %v4359_v17 = vpop.f32.mrb[56].mxu1 }
 0xce5   : > { %v4438_v39 = vmul.f32 0.35355338, %v4359_v17  ;;  %v5666_v40 = vpop.f32.mrb[57].mxu1  ;;  %v4013_v17 = vadd.f32 %v6511_v10, %v6197_v5 }
 0xce7   : > { %v4446_v4 = vsel %vm637_vm2, %v4438_v39, -inf }
 0xce8   : > { %4447 = vmax.xlane.f32.xlu1 %v4446_v4  ;;  %v4432_v18 = vpop.f32.mrb[58].mxu1 }
 0xce9   : > { %v4439_v8 = vmul.f32 0.35355338, %v4432_v18  ;;  %v5671_v20 = vpop.f32.mrb[59].mxu1  ;;  %v5905_v18 = vld [vmem:[%s6640_s3] sm:$0xff] }
 0xceb   : > { %v4449_v12 = vsel %vm637_vm2, %v4439_v8, -inf }
 0xcec   : > { %4450 = vmax.xlane.f32.xlu1 %v4449_v12 }
 0xd6d   : > { %v4442_v14 = vpop.xlane.xlu0 %4441 }
 0xd6e   : > { %v4452_v23 = vsub.f32 %v4436_v1, %v4442_v14 }
 0xd70   : > { %v4456_v25 = vmul.f32 1.442695, %v4452_v23 }
 0xd71   : > { %v4445_v26 = vpop.xlane.xlu1 %4444 }
 0xd72   : > { %5876 = vpow2.f32 %v4456_v25  ;;  %v4453_v30 = vsub.f32 %v4437_v27, %v4445_v26 }
 0xd74   : > { %v4458_v41 = vmul.f32 1.442695, %v4453_v30 }
 0xd75   : > { %v4448_v32 = vpop.xlane.xlu1 %4447 }
 0xd76   : > { %5878 = vpow2.f32 %v4458_v41  ;;  %v4454_v35 = vsub.f32 %v4438_v39, %v4448_v32  ;;  %v280_v41 = vld [vmem:[%s6641_s4 + $0x8] sm:$0xff]  ;;  %v279_v32 = vld [vmem:[%s6641_s4] sm:$0xff] }
 0xd78   : > { %v4460_v36 = vmul.f32 1.442695, %v4454_v35  ;;  %v281_v35 = vld [vmem:[%s6641_s4 + $0x10] sm:$0xff] }
 0xd79   : > { %v4451_v37 = vpop.xlane.xlu1 %4450 }
 0xd7a   : > { %5880 = vpow2.f32 %v4460_v36  ;;  %v4455_v42 = vsub.f32 %v4439_v8, %v4451_v37  ;;  %v282_v36 = vld [vmem:[%s6641_s4 + $0x18] sm:$0xff] }
 0xd7c   : > { %v5877_v49 = vpop.eup %5876  ;;  %v4462_v6 = vmul.f32 1.442695, %v4455_v42 }
 0xd7d   : > { %v4464_v22 = vsel %vm637_vm2, %v5877_v49, 0.0 }
 0xd7e   : > { %5882 = vpow2.f32 %v4462_v6  ;;  %4465 = vadd.xlane.f32.xlu0 %v4464_v22 }
 0xd80   : > { %v5879_v31 = vpop.eup %5878 }
 0xd81   : > { %v4467_v24 = vsel %vm637_vm2, %v5879_v31, 0.0 }
 0xd82   : > { %4468 = vadd.xlane.f32.xlu1 %v4467_v24 }
 0xd84   : > { %v5881_v50 = vpop.eup %5880 }
 0xd85   : > { %v4470_v51 = vsel %vm637_vm2, %v5881_v50, 0.0 }
 0xd86   : > { %4471 = vadd.xlane.f32.xlu0 %v4470_v51  ;;  %v5906_v51 = vld [vmem:[%s6640_s3 + $0x8] sm:$0xff] }
 0xd88   : > { %v5883_v38 = vpop.eup %5882 }
 0xd89   : > { %v4473_v52 = vsel %vm637_vm2, %v5883_v38, 0.0 }
 0xd8a   : > { %4474 = vadd.xlane.f32.xlu1 %v4473_v52  ;;  %v5908_v52 = vld [vmem:[%s6640_s3 + $0x18] sm:$0xff] }
 0xe0b   : > { %v4466_v53 = vpop.xlane.xlu0 %4465 }
 0xe0c   : > { %5884 = vrcp.f32 %v4466_v53 }
 0xe0f   : > { %v4469_v63 = vpop.xlane.xlu1 %4468 }
 0xe10   : > { %5886 = vrcp.f32 %v4469_v63 }
 0xe13   : > { %v4472_v33 = vpop.xlane.xlu0 %4471 }
 0xe14   : > { %5888 = vrcp.f32 %v4472_v33 }
 0xe16   : > { %v5885_v54 = vpop.eup %5884 }
 0xe17   : > { %v4480_v55 = vmul.f32 %v5885_v54, %v4466_v53  ;;  %v4475_v34 = vpop.xlane.xlu1 %4474 }
 0xe18   : > { %5890 = vrcp.f32 %v4475_v34 }
 0xe19   : > { %v4484_v46 = vsub.f32 2.0, %v4480_v55 }
 0xe1a   : > { %v5887_v47 = vpop.eup %5886 }
 0xe1b   : > { %v4488_v43 = vmul.f32 %v5885_v54, %v4484_v46  ;;  %v4481_v48 = vmul.f32 %v5887_v47, %v4469_v63 }
 0xe1d   : > { %v4492_v44 = vmul.f32 %v5877_v49, %v4488_v43  ;;  %v4485_v29 = vsub.f32 2.0, %v4481_v48 }
 0xe1e   : > { %v5889_v1 = vpop.eup %5888 }
 0xe1f   : > { %v4489_v28 = vmul.f32 %v5887_v47, %v4485_v29  ;;  %v4482_v0 = vmul.f32 %v5889_v1, %v4472_v33  ;;  %5675 = vmatmul.mubr.msk.f32.vlgmr.msra.gmra.mrb[56].mxu0 %vm637_vm2, %v4492_v44 }
 0xe20   : > { %5683 = vmatpush3.xpose.msk.msra.mxu0 %vm637_vm2, %v4008_v3  ;;  %5684 = vmatprep.mubr.msk.f32.mxu0 %vm5935_vm1, %v5934_v19 }
 0xe21   : > { %v4493_v27 = vmul.f32 %v5879_v31, %v4489_v28  ;;  %v4486_v15 = vsub.f32 2.0, %v4482_v0 }
 0xe22   : > { %v5891_v16 = vpop.eup %5890 }
 0xe23   : > { %v4490_v39 = vmul.f32 %v5889_v1, %v4486_v15  ;;  %v4483_v40 = vmul.f32 %v5891_v16, %v4475_v34  ;;  %5680 = vmatmul.mubr.msk.f32.vlgmr.msra.gmra.mrb[60].mxu1 %vm637_vm2, %v4493_v27 }
 0xe24   : > { %5688 = vmatpush3.xpose.msk.msra.mxu1 %vm637_vm2, %v4013_v17  ;;  %5689 = vmatprep.mubr.msk.f32.mxu1 %vm5935_vm1, %v5934_v19 }
 0xe25   : > { %v4494_v62 = vmul.f32 %v5881_v50, %v4490_v39  ;;  %v4487_v21 = vsub.f32 2.0, %v4483_v40 }
 0xe27   : > { %v4491_v4 = vmul.f32 %v5891_v16, %v4487_v21  ;;  %5685 = vmatmul.mubr.msk.f32.vlgmr.msra.gmra.mrb[58].mxu0 %vm637_vm2, %v4494_v62 }
 0xe28   : > { %5700 = vmatprep.mubr.msk.f32.mxu0 %vm344_vm0, %v5905_v18 }
 0xe29   : > { %v4495_v5 = vmul.f32 %v5883_v38, %v4491_v4  ;;  %v5907_v38 = vld [vmem:[%s6640_s3 + $0x10] sm:$0xff] }
 0xe2b   : > { %5690 = vmatmul.mubr.msk.f32.vlgmr.msra.gmra.mrb[62].mxu1 %vm637_vm2, %v4495_v5 }
 0xef2   : > { %v4568_v10 = vpop.f32.mrb[56].mxu0 }
 0xef3   : > { %v5676_v8 = vpop.f32.mrb[57].mxu0 }
 0xef6   : > { %v4644_v20 = vpop.f32.mrb[60].mxu1 }
 0xef7   : > { %v5814_v12 = vpack.i.bf16 %v4644_v20, %v4568_v10  ;;  %v5681_v14 = vpop.f32.mrb[61].mxu1 }
 0xef9   : > { %5815 = vxpose.xlu0.b32.start.end [1/1] (short) (narrow) %v5814_v12, 8 }
 0xefa   : > { %v4720_v19 = vpop.f32.mrb[58].mxu0 }
 0xefb   : > { %v5686_v23 = vpop.f32.mrb[59].mxu0 }
 0xefe   : > { %v4796_v25 = vpop.f32.mrb[62].mxu1 }
 0xeff   : > { %v5821_v26 = vpack.i.bf16 %v4796_v25, %v4720_v19  ;;  %v5691_v30 = vpop.f32.mrb[63].mxu1 }
 0xf01   : > { %5822 = vxpose.xlu1.b32.start.end [1/1] (short) (narrow) %v5821_v26, 8 }
 0xf1f   : > { %1429 = vperm.xlu1 %5771, %v280_v41  }
 0xf22   : > { %1424 = vperm.xlu0 %5770, %v279_v32  }
 0xf23   : > { %1434 = vperm.xlu1 %5771, %v281_v35  }
 0xf26   : > { %1439 = vperm.xlu0 %5770, %v282_v36  }
 0xf79   : > { %v5816_v37 = vpop.trf.xlu0 }
 0xf7a   : > { %v5820_v42 = vunpack.i.h.bf16 %v5816_v37  ;;  %v5817_v49 = vunpack.i.l.bf16 %v5816_v37 }
 0xf7c   : > { %v5730_v6 = vpack.c.bf16 %v5820_v42, %v5817_v49 }
 0xf7e   : > { %5731 = vmatprep.subr.bf16.mxu0 %v5730_v6 }
 0xf7f   : > { %5733 = vmatpush3.bf16.msra.mxu0 %v5730_v6 }
 0xf81   : > { %v5823_v22 = vpop.trf.xlu1 }
 0xf82   : > { %v5827_v31 = vunpack.i.h.bf16 %v5823_v22  ;;  %v5824_v24 = vunpack.i.l.bf16 %v5823_v22 }
 0xf84   : > { %v5734_v50 = vpack.c.bf16 %v5827_v31, %v5824_v24 }
 0xf86   : > { %5735 = vmatprep.subr.bf16.mxu0 %v5734_v50 }
 0xf87   : > { %5737 = vmatpush3.bf16.msra.mxu0 %v5734_v50 }
 0xf8a   : > { %5701 = vmatmul.mubr.msk.f32.vlgmr.msra.gmra.mrb[60].mxu0 %vm344_vm0, %v5906_v51 }
 0xf8b   : > { %5703 = vmatprep.mubr.msk.f32.mxu0 %vm344_vm0, %v5907_v38 }
 0xf8e   : > { %5704 = vmatmul.mubr.msk.f32.gmra.mrb[62].mxu0 %vm344_vm0, %v5908_v52 }
 0xf9e   : > { %v1430_v53 = vpop.permute.xlu1 %1429 }
 0xf9f   : > { %v1526_v55 = vadd.f32 %v6313_v57, %v1430_v53  ;;  %v2684_v34 = vadd.f32 %v6419_v7, %v1430_v53  ;;  %v3842_v7 = vadd.f32 %v6549_v45, %v1430_v53 }
 0xfa1   : > { %v1425_v63 = vpop.permute.xlu0 %1424 }
 0xfa2   : > { %v1521_v33 = vadd.f32 %v6315_v58, %v1425_v63  ;;  %v2679_v54 = vadd.f32 %v6421_v9, %v1425_v63  ;;  %v1435_v46 = vpop.permute.xlu1 %1434  ;;  %v3837_v57 = vadd.f32 %v6551_v56, %v1425_v63 }
 0xfa3   : > { %v1531_v47 = vadd.f32 %v6319_v60, %v1435_v46  ;;  %v2689_v43 = vadd.f32 %v6425_v13, %v1435_v46  ;;  %v3847_v44 = vadd.f32 %v6555_v2, %v1435_v46 }
 0xfa4   : > { %2697 = vxpose.xlu0.b32.start [1/4] (short) (narrow) %v2679_v54, 8  ;;  %1539 = vxpose.xlu1.b32.start [1/4] (short) (narrow) %v1521_v33, 8 }
 0xfa5   : > { %v1440_v48 = vpop.permute.xlu0 %1439 }
 0xfa6   : > { %v1536_v58 = vadd.f32 %v6317_v59, %v1440_v48  ;;  %v2694_v9 = vadd.f32 %v6423_v11, %v1440_v48  ;;  %v3852_v60 = vadd.f32 %v6553_v61, %v1440_v48 }
 0xfa8   : > { %2698 = vxpose.xlu0.b32.cont [2/4] (short) (narrow) %v2684_v34, 8  ;;  %1540 = vxpose.xlu1.b32.cont [2/4] (short) (narrow) %v1526_v55, 8 }
 0xfac   : > { %2699 = vxpose.xlu0.b32.cont [3/4] (short) (narrow) %v2689_v43, 8  ;;  %1541 = vxpose.xlu1.b32.cont [3/4] (short) (narrow) %v1531_v47, 8 }
 0xfb0   : > { %2700 = vxpose.xlu0.b32.end [4/4] (short) (narrow) %v2694_v9, 8  ;;  %1542 = vxpose.xlu1.b32.end [4/4] (short) (narrow) %v1536_v58, 8 }
 0xfb4   : > { %3855 = vxpose.xlu0.b32.start [1/4] (short) (narrow) %v3837_v57, 8 }
 0xfb8   : > { %3856 = vxpose.xlu0.b32.cont [2/4] (short) (narrow) %v3842_v7, 8 }
 0xfbc   : > { %3857 = vxpose.xlu0.b32.cont [3/4] (short) (narrow) %v3847_v44, 8 }
 0xfc0   : > { %3858 = vxpose.xlu0.b32.end [4/4] (short) (narrow) %v3852_v60, 8 }
0x1024   : > { %v2713_v13 = vpop.trf.xlu0  ;;  %v1555_v61 = vpop.trf.xlu1 }
0x1025   : > { %5046 = vrot.lane.b32.xlu0 %v2713_v13, %s5938_s25 }
0x1034   : > { %v3871_v2 = vpop.trf.xlu0 }
0x105d   : > { %v5702_v59 = vpop.f32.mrb[60].mxu0 }
0x105e   : > { %v4994_v29 = vpop.f32.mrb[61].mxu0  ;;  %v5000_v56 = vadd.f32 %v5702_v59, %v1430_v53 }
0x105f   : > { %v4995_v11 = vadd.f32 %v4994_v29, %v1425_v63 }
0x1061   : > { %v5705_v1 = vpop.f32.mrb[62].mxu0  ;;  %5013 = vxpose.xlu1.b32.start [1/4] (short) (narrow) %v4995_v11, 8 }
0x1062   : > { %v5004_v3 = vpop.f32.mrb[63].mxu0  ;;  %v5010_v28 = vadd.f32 %v5705_v1, %v1440_v48 }
0x1063   : > { %v5005_v45 = vadd.f32 %v5004_v3, %v1435_v46 }
0x1065   : > { %5014 = vxpose.xlu1.b32.cont [2/4] (short) (narrow) %v5000_v56, 8 }
0x1069   : > { %5015 = vxpose.xlu1.b32.cont [3/4] (short) (narrow) %v5005_v45, 8 }
0x106d   : > { %5016 = vxpose.xlu1.b32.end [4/4] (short) (narrow) %v5010_v28, 8 }
0x108b   : > { %5050 = vrot.lane.b32.xlu1 %v3871_v2, %s5937_s24 }
0x1097   : > { %v5047_v27 = vpop.permute.xlu0 %5046 }
0x1098   : > { %v5057_v16 = vsel %vm344_vm0, %v1555_v61, %v5047_v27 }
0x10e1   : > { %v5029_v0 = vpop.trf.xlu1 }
0x10e2   : > { %5054 = vrot.lane.b32.xlu1 %v5029_v0, %s5936_s11 }
0x10fd   : > { %v5051_v15 = vpop.permute.xlu1 %5050 }
0x10fe   : > { %v5059_v17 = vsel %vm5058_vm3, %v5057_v16, %v5051_v15 }
0x1154   : > { %v5055_v39 = vpop.permute.xlu1 %5054 }
0x1155   : > { %v5061_v40 = vsel %vm5060_vm4, %v5059_v17, %v5055_v39 }
0x1156   : > { %5062 = vst [vmem:[%s250_s9] sm:$0xff] %v5061_v40 }
0x1157 PF: > { %s15_s20 = sadd.s32 1, %s5931_s20   ;;  %s6643_s18 = smov %s5927_s19 }
0x1158   : > { %p12_p5 = scmp.ge.s32.totalorder %s15_s20, 4   ;;  %s6644_s19 = smov %s6646_s21 }
0x115a   :  { %14 = sbr.rel (!%p12_p5) target bundleno = 2 (0x2), region = 70 }

</bundles_post_ra>
